<compile_context>
chip_gen: v7x
topology: tpu7x:2x2x1
jax: 0.10.0
libtpu: 0.0.40
codegen_flags: <defaults>
</compile_context>

<pallas_src>
import functools

import jax
import jax.numpy as jnp
import numpy as np
from jax import lax
from jax.experimental import pallas as pl
from jax.experimental.pallas import tpu as pltpu


def _cnn_kernel(x_ref, w1t_ref, b1_ref, w2_ref, b2_ref,
                fc1w_ref, fc1b_ref, fc2w_ref, fc2b_ref,
                out_ref, h1pad_ref, *, seq_len, batch_tile, c1, c2, nh):
    L, TB = seq_len, batch_tile
    f32 = jnp.float32
    wdt = w2_ref.dtype

    x2d = x_ref[...].astype(f32)                 # (TB, L)  lanes = sequence
    w1t = w1t_ref[...]                           # (3, c1)
    b1 = b1_ref[...]                             # (1, c1)

    # ---- Conv1d(1, c1, k=3, pad=1): per-position VPU outer products,
    #      staged into a zero-padded scratch; lanes of the scratch are
    #      (l+1)*c1 + c, with c1 zeros on each end as the conv padding. ----
    zeros_c1 = jnp.zeros((TB, c1), f32)
    h1pad_ref[:, 0:c1] = zeros_c1                              # l = -1 pad
    h1pad_ref[:, (L + 1) * c1:(L + 2) * c1] = zeros_c1         # l = L  pad
    for l in range(L):
        h = x2d[:, l:l + 1] * w1t[1:2, :] + b1                 # center tap
        if l > 0:
            h = h + x2d[:, l - 1:l] * w1t[0:1, :]              # left tap
        if l < L - 1:
            h = h + x2d[:, l + 1:l + 2] * w1t[2:3, :]          # right tap
        h1pad_ref[:, (l + 1) * c1:(l + 2) * c1] = jnp.maximum(h, 0.0)

    # ---- Conv1d(c1, c2, k=3, pad=1) fused with Linear(c2*L, nh):
    #      per position one K=3*c1 MXU matmul (conv2, taps read as one
    #      contiguous lane window -> no concat/relayout) and one accumulated
    #      K=c2 MXU matmul against the matching slice of the FC1 weight.
    #      No flatten anywhere. ----
    w2m = w2_ref[...]                            # (3*c1, c2)
    b2 = b2_ref[...]                             # (1, c2)
    acc = jnp.zeros((TB, nh), f32)
    for l in range(L):
        cat = h1pad_ref[:, l * c1:(l + 3) * c1]  # (TB, 3*c1): taps l-1, l, l+1
        h2_l = jnp.dot(cat.astype(wdt), w2m, preferred_element_type=f32) + b2
        h2_l = jnp.maximum(h2_l, 0.0)            # (TB, c2)
        acc = acc + jnp.dot(h2_l.astype(wdt),
                            fc1w_ref[l * c2:(l + 1) * c2, :],
                            preferred_element_type=f32)
    h3 = jnp.maximum(acc + fc1b_ref[...], 0.0)   # (TB, nh)

    # ---- Linear(nh, 1) + Sigmoid: (1, nh) x (TB, nh)^T on the MXU fuses FC2
    #      with the transpose and writes a lane-dense (1, TB) row. ----
    z = lax.dot_general(fc2w_ref[...], h3, (((1,), (1,)), ((), ())),
                        preferred_element_type=f32) + fc2b_ref[...]  # (1, TB)
    e = jnp.exp(-jnp.abs(z))                                          # stable sigmoid
    sig = jnp.where(z >= 0, 1.0 / (1.0 + e), e / (1.0 + e))
    out_ref[...] = sig[None].astype(out_ref.dtype)                    # (1, 1, TB)


def _default_batch_tile(B, L):
    """~1024 rows per grid step, a multiple of 8 that divides B (else B)."""
    target = max(8, 1024 // max(L, 1))
    for d in range(min(B, target), 0, -1):
        if B % d == 0 and d % 8 == 0:
            return d
    return B


def cnn_classifier_forward(x, params, *, batch_tile=None,
                           weight_dtype=jnp.bfloat16,
                           vmem_limit_bytes=48 * 1024 * 1024):
    """x: (B, L) float. Returns (B, 1) sigmoid probabilities.

    batch_tile: samples per grid step (default: ~1024 rows/step -> grid >= 2
    at scale, so the 'parallel' axis shards across v7x TensorCores and the
    activation DMA overlaps with compute on v5e/v6e).
    weight_dtype: dtype of the MXU weight operands (bf16 default; pass
    jnp.float32 for a bit-comparable check against the f32 reference).
    """
    B, L = x.shape
    w1, b1, w2, b2, fc1w, fc1b, fc2w, fc2b = params
    c1, c2, nh = w1.shape[0], w2.shape[0], fc1w.shape[0]
    assert fc1w.shape[1] == c2 * L

    TB = _default_batch_tile(B, L) if batch_tile is None else batch_tile
    assert B % TB == 0, "batch must be divisible by batch_tile"
    assert TB == B or TB % 8 == 0, "batch_tile must be a multiple of 8 when tiling"
    grid = B // TB

    xf = x.astype(jnp.float32)                                   # (B, L), lane-dense

    # Weight layout permutations (pure glue, no activation FLOPs):
    w1t = jnp.transpose(w1[:, 0, :], (1, 0)).astype(jnp.float32)           # (3, c1)
    # cat lanes are [tap-1 | tap0 | tap+1], each c1 wide -> rows t*c1 + c.
    w2cat = (jnp.transpose(w2, (2, 1, 0)).reshape(3 * c1, c2)
             .astype(weight_dtype))                                        # (3*c1, c2)
    # PyTorch flatten is channel-major (c*L + l); kernel accumulates per l
    # with lanes = c, so fc1w rows are ordered l*c2 + c.
    fc1w_k = (jnp.transpose(fc1w.reshape(nh, c2, L), (2, 1, 0))
              .reshape(L * c2, nh).astype(weight_dtype))                   # (c2*L, nh)
    b1_2 = b1.reshape(1, c1).astype(jnp.float32)
    b2_2 = b2.reshape(1, c2).astype(jnp.float32)
    fc1b_2 = fc1b.reshape(1, nh).astype(jnp.float32)
    fc2w_2 = fc2w.reshape(1, nh).astype(jnp.float32)
    fc2b_2 = fc2b.reshape(1, 1).astype(jnp.float32)

    kernel = functools.partial(_cnn_kernel, seq_len=L, batch_tile=TB,
                               c1=c1, c2=c2, nh=nh)

    def full(a):
        nd = a.ndim
        return pl.BlockSpec(a.shape, lambda i, _nd=nd: (0,) * _nd)

    weights = (w1t, b1_2, w2cat, b2_2, fc1w_k, fc1b_2, fc2w_2, fc2b_2)
    flops = (6 * B * L * c1                 # conv1 (VPU)
             + 2 * B * L * (3 * c1) * c2    # conv2 (MXU)
             + 2 * B * L * c2 * nh          # fc1   (MXU)
             + 2 * B * nh)                  # fc2   (MXU)
    bytes_accessed = (xf.size * xf.dtype.itemsize
                      + sum(int(a.size) * a.dtype.itemsize for a in weights)
                      + B * 4)
    cost = pl.CostEstimate(flops=int(flops), transcendentals=int(B),
                           bytes_accessed=int(bytes_accessed))

    out3 = pl.pallas_call(
        kernel,
        out_shape=jax.ShapeDtypeStruct((grid, 1, TB), jnp.float32),
        grid_spec=pltpu.PrefetchScalarGridSpec(
            num_scalar_prefetch=0,
            grid=(grid,),
            in_specs=[
                pl.BlockSpec((TB, L), lambda i: (i, 0)),   # activations, lane-dense
                full(w1t), full(b1_2), full(w2cat), full(b2_2),
                full(fc1w_k), full(fc1b_2), full(fc2w_2), full(fc2b_2),
            ],
            out_specs=pl.BlockSpec((1, 1, TB), lambda i: (i, 0, 0)),
            scratch_shapes=[pltpu.VMEM((TB, (L + 2) * c1), jnp.float32)],
        ),
        compiler_params=pltpu.CompilerParams(
            dimension_semantics=("parallel",),
            vmem_limit_bytes=vmem_limit_bytes),
        cost_estimate=cost,
    )(xf, *weights)

    return out3.reshape(B, 1)


def init_params(key, input_size):
    """Deterministic PyTorch-shaped parameters (uniform, fan-in scaled)."""
    ks = jax.random.split(key, 8)

    def u(k, shape, fan_in):
        bound = 1.0 / np.sqrt(fan_in)
        return jax.random.uniform(k, shape, jnp.float32, -bound, bound)

    w1 = u(ks[0], (32, 1, 3), 1 * 3)
    b1 = u(ks[1], (32,), 1 * 3)
    w2 = u(ks[2], (64, 32, 3), 32 * 3)
    b2 = u(ks[3], (64,), 32 * 3)
    fc1w = u(ks[4], (128, 64 * input_size), 64 * input_size)
    fc1b = u(ks[5], (128,), 64 * input_size)
    fc2w = u(ks[6], (1, 128), 128)
    fc2b = u(ks[7], (1,), 128)
    return (w1, b1, w2, b2, fc1w, fc1b, fc2w, fc2b)


def reference_forward(x, params):
    """Pure-JAX replica of the PyTorch forward (NCL conv semantics)."""
    w1, b1, w2, b2, fc1w, fc1b, fc2w, fc2b = params
    xb = x[:, None, :].astype(jnp.float32)
    dn = ("NCH", "OIH", "NCH")
    h1 = jax.lax.conv_general_dilated(xb, w1, (1,), [(1, 1)], dimension_numbers=dn)
    h1 = jnp.maximum(h1 + b1[None, :, None], 0.0)
    h2 = jax.lax.conv_general_dilated(h1, w2, (1,), [(1, 1)], dimension_numbers=dn)
    h2 = jnp.maximum(h2 + b2[None, :, None], 0.0)
    flat = h2.reshape(x.shape[0], -1)            # channel-major flatten (c*L + l)
    h3 = jnp.maximum(flat @ fc1w.T + fc1b, 0.0)
    z = h3 @ fc2w.T + fc2b
    return jax.nn.sigmoid(z)


if __name__ == "__main__":
    B, L = 8, 16                      # batch=8, input_size=16
    key = jax.random.PRNGKey(0)
    kx, kp = jax.random.split(key)
    x = jax.random.normal(kx, (B, L), jnp.float32)
    params = init_params(kp, L)

    ref = reference_forward(x, params)

    # f32-weight path: bit-comparable numerics check.
    out_f32 = jax.block_until_ready(
        cnn_classifier_forward(x, params, weight_dtype=jnp.float32))
    assert out_f32.shape == (B, 1)
    np.testing.assert_allclose(np.asarray(out_f32), np.asarray(ref),
                               rtol=1e-3, atol=1e-3)

    # Default (bf16 weight) path: the one you'd run for throughput.
    out_bf16 = jax.block_until_ready(cnn_classifier_forward(x, params))
    assert out_bf16.shape == (B, 1)
    np.testing.assert_allclose(np.asarray(out_bf16), np.asarray(ref),
                               rtol=5e-2, atol=2e-2)

    print("KERNEL_OK")
</pallas_src>

<mosaic_0001>
module attributes {stable_mosaic.version = 11 : i64} {
  func.func @_cnn_kernel(%arg0: i32, %arg1: memref<8x16xf32, #tpu.memory_space<vmem>>, %arg2: memref<3x32xf32, #tpu.memory_space<vmem>>, %arg3: memref<1x32xf32, #tpu.memory_space<vmem>>, %arg4: memref<96x64xf32, #tpu.memory_space<vmem>>, %arg5: memref<1x64xf32, #tpu.memory_space<vmem>>, %arg6: memref<1024x128xf32, #tpu.memory_space<vmem>>, %arg7: memref<1x128xf32, #tpu.memory_space<vmem>>, %arg8: memref<1x128xf32, #tpu.memory_space<vmem>>, %arg9: memref<1x1xf32, #tpu.memory_space<vmem>>, %arg10: memref<1x1x8xf32, #tpu.memory_space<vmem>>, %arg11: memref<8x576xf32, #tpu.memory_space<vmem>>) attributes {dimension_semantics = [#tpu.dimension_semantics<parallel>], iteration_bounds = array<i64: 1>, scalar_prefetch = 0 : i64, scratch_operands = 1 : i64, tpu.core_type = #tpu.core_type<tc>, window_params = [{transform_indices = @transform_0, window_bounds = array<i64: 8, 16>}, {pipeline_mode = #tpu.pipeline_mode<synchronous>, transform_indices = @transform_1, window_bounds = array<i64: 3, 32>}, {pipeline_mode = #tpu.pipeline_mode<synchronous>, transform_indices = @transform_2, window_bounds = array<i64: 1, 32>}, {pipeline_mode = #tpu.pipeline_mode<synchronous>, transform_indices = @transform_3, window_bounds = array<i64: 96, 64>}, {pipeline_mode = #tpu.pipeline_mode<synchronous>, transform_indices = @transform_4, window_bounds = array<i64: 1, 64>}, {pipeline_mode = #tpu.pipeline_mode<synchronous>, transform_indices = @transform_5, window_bounds = array<i64: 1024, 128>}, {pipeline_mode = #tpu.pipeline_mode<synchronous>, transform_indices = @transform_6, window_bounds = array<i64: 1, 128>}, {pipeline_mode = #tpu.pipeline_mode<synchronous>, transform_indices = @transform_7, window_bounds = array<i64: 1, 128>}, {pipeline_mode = #tpu.pipeline_mode<synchronous>, transform_indices = @transform_8, window_bounds = array<i64: 1, 1>}, {transform_indices = @transform_9, window_bounds = array<i64: 1, 1, 8>}]} {
    %c0 = arith.constant 0 : index
    %c0_0 = arith.constant 0 : index
    %0 = vector.load %arg1[%c0, %c0_0] : memref<8x16xf32, #tpu.memory_space<vmem>>, vector<8x16xf32>
    %c0_1 = arith.constant 0 : index
    %c0_2 = arith.constant 0 : index
    %1 = vector.load %arg2[%c0_1, %c0_2] : memref<3x32xf32, #tpu.memory_space<vmem>>, vector<3x32xf32>
    %c0_3 = arith.constant 0 : index
    %c0_4 = arith.constant 0 : index
    %2 = vector.load %arg3[%c0_3, %c0_4] : memref<1x32xf32, #tpu.memory_space<vmem>>, vector<1x32xf32>
    %cst = arith.constant 0.000000e+00 : f32
    %3 = vector.broadcast %cst : f32 to vector<8x32xf32>
    %c0_5 = arith.constant 0 : index
    %c0_6 = arith.constant 0 : index
    %4 = vector.load %arg11[%c0_5, %c0_6] : memref<8x576xf32, #tpu.memory_space<vmem>>, vector<8x32xf32>
    tpu.vector_store %arg11[%c0_5, %c0_6], %3 {strides = array<i32>} : memref<8x576xf32, #tpu.memory_space<vmem>>, vector<8x32xf32>,
    %c0_7 = arith.constant 0 : index
    %c544 = arith.constant 544 : index
    %5 = vector.load %arg11[%c0_7, %c544] : memref<8x576xf32, #tpu.memory_space<vmem>>, vector<8x32xf32>
    tpu.vector_store %arg11[%c0_7, %c544], %3 {strides = array<i32>} : memref<8x576xf32, #tpu.memory_space<vmem>>, vector<8x32xf32>,
    %6 = vector.extract_strided_slice %0 {offsets = [0, 0], sizes = [8, 1], strides = [1, 1]} : vector<8x16xf32> to vector<8x1xf32>
    %7 = vector.extract_strided_slice %1 {offsets = [1, 0], sizes = [1, 32], strides = [1, 1]} : vector<3x32xf32> to vector<1x32xf32>
    %8 = vector.broadcast %6 : vector<8x1xf32> to vector<8x32xf32>
    %9 = vector.broadcast %7 : vector<1x32xf32> to vector<8x32xf32>
    %10 = arith.mulf %8, %9 : vector<8x32xf32>
    %11 = vector.broadcast %2 : vector<1x32xf32> to vector<8x32xf32>
    %12 = arith.addf %10, %11 : vector<8x32xf32>
    %13 = vector.extract_strided_slice %0 {offsets = [0, 1], sizes = [8, 1], strides = [1, 1]} : vector<8x16xf32> to vector<8x1xf32>
    %14 = vector.extract_strided_slice %1 {offsets = [2, 0], sizes = [1, 32], strides = [1, 1]} : vector<3x32xf32> to vector<1x32xf32>
    %15 = vector.broadcast %13 : vector<8x1xf32> to vector<8x32xf32>
    %16 = vector.broadcast %14 : vector<1x32xf32> to vector<8x32xf32>
    %17 = arith.mulf %15, %16 : vector<8x32xf32>
    %18 = arith.addf %12, %17 : vector<8x32xf32>
    %cst_8 = arith.constant 0.000000e+00 : f32
    %19 = vector.broadcast %cst_8 : f32 to vector<8x32xf32>
    %20 = arith.maximumf %18, %19 : vector<8x32xf32>
    %c0_9 = arith.constant 0 : index
    %c32 = arith.constant 32 : index
    %21 = vector.load %arg11[%c0_9, %c32] : memref<8x576xf32, #tpu.memory_space<vmem>>, vector<8x32xf32>
    tpu.vector_store %arg11[%c0_9, %c32], %20 {strides = array<i32>} : memref<8x576xf32, #tpu.memory_space<vmem>>, vector<8x32xf32>,
    %22 = vector.extract_strided_slice %0 {offsets = [0, 1], sizes = [8, 1], strides = [1, 1]} : vector<8x16xf32> to vector<8x1xf32>
    %23 = vector.extract_strided_slice %1 {offsets = [1, 0], sizes = [1, 32], strides = [1, 1]} : vector<3x32xf32> to vector<1x32xf32>
    %24 = vector.broadcast %22 : vector<8x1xf32> to vector<8x32xf32>
    %25 = vector.broadcast %23 : vector<1x32xf32> to vector<8x32xf32>
    %26 = arith.mulf %24, %25 : vector<8x32xf32>
    %27 = vector.broadcast %2 : vector<1x32xf32> to vector<8x32xf32>
    %28 = arith.addf %26, %27 : vector<8x32xf32>
    %29 = vector.extract_strided_slice %0 {offsets = [0, 0], sizes = [8, 1], strides = [1, 1]} : vector<8x16xf32> to vector<8x1xf32>
    %30 = vector.extract_strided_slice %1 {offsets = [0, 0], sizes = [1, 32], strides = [1, 1]} : vector<3x32xf32> to vector<1x32xf32>
    %31 = vector.broadcast %29 : vector<8x1xf32> to vector<8x32xf32>
    %32 = vector.broadcast %30 : vector<1x32xf32> to vector<8x32xf32>
    %33 = arith.mulf %31, %32 : vector<8x32xf32>
    %34 = arith.addf %28, %33 : vector<8x32xf32>
    %35 = vector.extract_strided_slice %0 {offsets = [0, 2], sizes = [8, 1], strides = [1, 1]} : vector<8x16xf32> to vector<8x1xf32>
    %36 = vector.extract_strided_slice %1 {offsets = [2, 0], sizes = [1, 32], strides = [1, 1]} : vector<3x32xf32> to vector<1x32xf32>
    %37 = vector.broadcast %35 : vector<8x1xf32> to vector<8x32xf32>
    %38 = vector.broadcast %36 : vector<1x32xf32> to vector<8x32xf32>
    %39 = arith.mulf %37, %38 : vector<8x32xf32>
    %40 = arith.addf %34, %39 : vector<8x32xf32>
    %cst_10 = arith.constant 0.000000e+00 : f32
    %41 = vector.broadcast %cst_10 : f32 to vector<8x32xf32>
    %42 = arith.maximumf %40, %41 : vector<8x32xf32>
    %c0_11 = arith.constant 0 : index
    %c64 = arith.constant 64 : index
    %43 = vector.load %arg11[%c0_11, %c64] : memref<8x576xf32, #tpu.memory_space<vmem>>, vector<8x32xf32>
    tpu.vector_store %arg11[%c0_11, %c64], %42 {strides = array<i32>} : memref<8x576xf32, #tpu.memory_space<vmem>>, vector<8x32xf32>,
    %44 = vector.extract_strided_slice %0 {offsets = [0, 2], sizes = [8, 1], strides = [1, 1]} : vector<8x16xf32> to vector<8x1xf32>
    %45 = vector.extract_strided_slice %1 {offsets = [1, 0], sizes = [1, 32], strides = [1, 1]} : vector<3x32xf32> to vector<1x32xf32>
    %46 = vector.broadcast %44 : vector<8x1xf32> to vector<8x32xf32>
    %47 = vector.broadcast %45 : vector<1x32xf32> to vector<8x32xf32>
    %48 = arith.mulf %46, %47 : vector<8x32xf32>
    %49 = vector.broadcast %2 : vector<1x32xf32> to vector<8x32xf32>
    %50 = arith.addf %48, %49 : vector<8x32xf32>
    %51 = vector.extract_strided_slice %0 {offsets = [0, 1], sizes = [8, 1], strides = [1, 1]} : vector<8x16xf32> to vector<8x1xf32>
    %52 = vector.extract_strided_slice %1 {offsets = [0, 0], sizes = [1, 32], strides = [1, 1]} : vector<3x32xf32> to vector<1x32xf32>
    %53 = vector.broadcast %51 : vector<8x1xf32> to vector<8x32xf32>
    %54 = vector.broadcast %52 : vector<1x32xf32> to vector<8x32xf32>
    %55 = arith.mulf %53, %54 : vector<8x32xf32>
    %56 = arith.addf %50, %55 : vector<8x32xf32>
    %57 = vector.extract_strided_slice %0 {offsets = [0, 3], sizes = [8, 1], strides = [1, 1]} : vector<8x16xf32> to vector<8x1xf32>
    %58 = vector.extract_strided_slice %1 {offsets = [2, 0], sizes = [1, 32], strides = [1, 1]} : vector<3x32xf32> to vector<1x32xf32>
    %59 = vector.broadcast %57 : vector<8x1xf32> to vector<8x32xf32>
    %60 = vector.broadcast %58 : vector<1x32xf32> to vector<8x32xf32>
    %61 = arith.mulf %59, %60 : vector<8x32xf32>
    %62 = arith.addf %56, %61 : vector<8x32xf32>
    %cst_12 = arith.constant 0.000000e+00 : f32
    %63 = vector.broadcast %cst_12 : f32 to vector<8x32xf32>
    %64 = arith.maximumf %62, %63 : vector<8x32xf32>
    %c0_13 = arith.constant 0 : index
    %c96 = arith.constant 96 : index
    %65 = vector.load %arg11[%c0_13, %c96] : memref<8x576xf32, #tpu.memory_space<vmem>>, vector<8x32xf32>
    tpu.vector_store %arg11[%c0_13, %c96], %64 {strides = array<i32>} : memref<8x576xf32, #tpu.memory_space<vmem>>, vector<8x32xf32>,
    %66 = vector.extract_strided_slice %0 {offsets = [0, 3], sizes = [8, 1], strides = [1, 1]} : vector<8x16xf32> to vector<8x1xf32>
    %67 = vector.extract_strided_slice %1 {offsets = [1, 0], sizes = [1, 32], strides = [1, 1]} : vector<3x32xf32> to vector<1x32xf32>
    %68 = vector.broadcast %66 : vector<8x1xf32> to vector<8x32xf32>
    %69 = vector.broadcast %67 : vector<1x32xf32> to vector<8x32xf32>
    %70 = arith.mulf %68, %69 : vector<8x32xf32>
    %71 = vector.broadcast %2 : vector<1x32xf32> to vector<8x32xf32>
    %72 = arith.addf %70, %71 : vector<8x32xf32>
    %73 = vector.extract_strided_slice %0 {offsets = [0, 2], sizes = [8, 1], strides = [1, 1]} : vector<8x16xf32> to vector<8x1xf32>
    %74 = vector.extract_strided_slice %1 {offsets = [0, 0], sizes = [1, 32], strides = [1, 1]} : vector<3x32xf32> to vector<1x32xf32>
    %75 = vector.broadcast %73 : vector<8x1xf32> to vector<8x32xf32>
    %76 = vector.broadcast %74 : vector<1x32xf32> to vector<8x32xf32>
    %77 = arith.mulf %75, %76 : vector<8x32xf32>
    %78 = arith.addf %72, %77 : vector<8x32xf32>
    %79 = vector.extract_strided_slice %0 {offsets = [0, 4], sizes = [8, 1], strides = [1, 1]} : vector<8x16xf32> to vector<8x1xf32>
    %80 = vector.extract_strided_slice %1 {offsets = [2, 0], sizes = [1, 32], strides = [1, 1]} : vector<3x32xf32> to vector<1x32xf32>
    %81 = vector.broadcast %79 : vector<8x1xf32> to vector<8x32xf32>
    %82 = vector.broadcast %80 : vector<1x32xf32> to vector<8x32xf32>
    %83 = arith.mulf %81, %82 : vector<8x32xf32>
    %84 = arith.addf %78, %83 : vector<8x32xf32>
    %cst_14 = arith.constant 0.000000e+00 : f32
    %85 = vector.broadcast %cst_14 : f32 to vector<8x32xf32>
    %86 = arith.maximumf %84, %85 : vector<8x32xf32>
    %c0_15 = arith.constant 0 : index
    %c128 = arith.constant 128 : index
    %87 = vector.load %arg11[%c0_15, %c128] : memref<8x576xf32, #tpu.memory_space<vmem>>, vector<8x32xf32>
    tpu.vector_store %arg11[%c0_15, %c128], %86 {strides = array<i32>} : memref<8x576xf32, #tpu.memory_space<vmem>>, vector<8x32xf32>,
    %88 = vector.extract_strided_slice %0 {offsets = [0, 4], sizes = [8, 1], strides = [1, 1]} : vector<8x16xf32> to vector<8x1xf32>
    %89 = vector.extract_strided_slice %1 {offsets = [1, 0], sizes = [1, 32], strides = [1, 1]} : vector<3x32xf32> to vector<1x32xf32>
    %90 = vector.broadcast %88 : vector<8x1xf32> to vector<8x32xf32>
    %91 = vector.broadcast %89 : vector<1x32xf32> to vector<8x32xf32>
    %92 = arith.mulf %90, %91 : vector<8x32xf32>
    %93 = vector.broadcast %2 : vector<1x32xf32> to vector<8x32xf32>
    %94 = arith.addf %92, %93 : vector<8x32xf32>
    %95 = vector.extract_strided_slice %0 {offsets = [0, 3], sizes = [8, 1], strides = [1, 1]} : vector<8x16xf32> to vector<8x1xf32>
    %96 = vector.extract_strided_slice %1 {offsets = [0, 0], sizes = [1, 32], strides = [1, 1]} : vector<3x32xf32> to vector<1x32xf32>
    %97 = vector.broadcast %95 : vector<8x1xf32> to vector<8x32xf32>
    %98 = vector.broadcast %96 : vector<1x32xf32> to vector<8x32xf32>
    %99 = arith.mulf %97, %98 : vector<8x32xf32>
    %100 = arith.addf %94, %99 : vector<8x32xf32>
    %101 = vector.extract_strided_slice %0 {offsets = [0, 5], sizes = [8, 1], strides = [1, 1]} : vector<8x16xf32> to vector<8x1xf32>
    %102 = vector.extract_strided_slice %1 {offsets = [2, 0], sizes = [1, 32], strides = [1, 1]} : vector<3x32xf32> to vector<1x32xf32>
    %103 = vector.broadcast %101 : vector<8x1xf32> to vector<8x32xf32>
    %104 = vector.broadcast %102 : vector<1x32xf32> to vector<8x32xf32>
    %105 = arith.mulf %103, %104 : vector<8x32xf32>
    %106 = arith.addf %100, %105 : vector<8x32xf32>
    %cst_16 = arith.constant 0.000000e+00 : f32
    %107 = vector.broadcast %cst_16 : f32 to vector<8x32xf32>
    %108 = arith.maximumf %106, %107 : vector<8x32xf32>
    %c0_17 = arith.constant 0 : index
    %c160 = arith.constant 160 : index
    %109 = vector.load %arg11[%c0_17, %c160] : memref<8x576xf32, #tpu.memory_space<vmem>>, vector<8x32xf32>
    tpu.vector_store %arg11[%c0_17, %c160], %108 {strides = array<i32>} : memref<8x576xf32, #tpu.memory_space<vmem>>, vector<8x32xf32>,
    %110 = vector.extract_strided_slice %0 {offsets = [0, 5], sizes = [8, 1], strides = [1, 1]} : vector<8x16xf32> to vector<8x1xf32>
    %111 = vector.extract_strided_slice %1 {offsets = [1, 0], sizes = [1, 32], strides = [1, 1]} : vector<3x32xf32> to vector<1x32xf32>
    %112 = vector.broadcast %110 : vector<8x1xf32> to vector<8x32xf32>
    %113 = vector.broadcast %111 : vector<1x32xf32> to vector<8x32xf32>
    %114 = arith.mulf %112, %113 : vector<8x32xf32>
    %115 = vector.broadcast %2 : vector<1x32xf32> to vector<8x32xf32>
    %116 = arith.addf %114, %115 : vector<8x32xf32>
    %117 = vector.extract_strided_slice %0 {offsets = [0, 4], sizes = [8, 1], strides = [1, 1]} : vector<8x16xf32> to vector<8x1xf32>
    %118 = vector.extract_strided_slice %1 {offsets = [0, 0], sizes = [1, 32], strides = [1, 1]} : vector<3x32xf32> to vector<1x32xf32>
    %119 = vector.broadcast %117 : vector<8x1xf32> to vector<8x32xf32>
    %120 = vector.broadcast %118 : vector<1x32xf32> to vector<8x32xf32>
    %121 = arith.mulf %119, %120 : vector<8x32xf32>
    %122 = arith.addf %116, %121 : vector<8x32xf32>
    %123 = vector.extract_strided_slice %0 {offsets = [0, 6], sizes = [8, 1], strides = [1, 1]} : vector<8x16xf32> to vector<8x1xf32>
    %124 = vector.extract_strided_slice %1 {offsets = [2, 0], sizes = [1, 32], strides = [1, 1]} : vector<3x32xf32> to vector<1x32xf32>
    %125 = vector.broadcast %123 : vector<8x1xf32> to vector<8x32xf32>
    %126 = vector.broadcast %124 : vector<1x32xf32> to vector<8x32xf32>
    %127 = arith.mulf %125, %126 : vector<8x32xf32>
    %128 = arith.addf %122, %127 : vector<8x32xf32>
    %cst_18 = arith.constant 0.000000e+00 : f32
    %129 = vector.broadcast %cst_18 : f32 to vector<8x32xf32>
    %130 = arith.maximumf %128, %129 : vector<8x32xf32>
    %c0_19 = arith.constant 0 : index
    %c192 = arith.constant 192 : index
    %131 = vector.load %arg11[%c0_19, %c192] : memref<8x576xf32, #tpu.memory_space<vmem>>, vector<8x32xf32>
    tpu.vector_store %arg11[%c0_19, %c192], %130 {strides = array<i32>} : memref<8x576xf32, #tpu.memory_space<vmem>>, vector<8x32xf32>,
    %132 = vector.extract_strided_slice %0 {offsets = [0, 6], sizes = [8, 1], strides = [1, 1]} : vector<8x16xf32> to vector<8x1xf32>
    %133 = vector.extract_strided_slice %1 {offsets = [1, 0], sizes = [1, 32], strides = [1, 1]} : vector<3x32xf32> to vector<1x32xf32>
    %134 = vector.broadcast %132 : vector<8x1xf32> to vector<8x32xf32>
    %135 = vector.broadcast %133 : vector<1x32xf32> to vector<8x32xf32>
    %136 = arith.mulf %134, %135 : vector<8x32xf32>
    %137 = vector.broadcast %2 : vector<1x32xf32> to vector<8x32xf32>
    %138 = arith.addf %136, %137 : vector<8x32xf32>
    %139 = vector.extract_strided_slice %0 {offsets = [0, 5], sizes = [8, 1], strides = [1, 1]} : vector<8x16xf32> to vector<8x1xf32>
    %140 = vector.extract_strided_slice %1 {offsets = [0, 0], sizes = [1, 32], strides = [1, 1]} : vector<3x32xf32> to vector<1x32xf32>
    %141 = vector.broadcast %139 : vector<8x1xf32> to vector<8x32xf32>
    %142 = vector.broadcast %140 : vector<1x32xf32> to vector<8x32xf32>
    %143 = arith.mulf %141, %142 : vector<8x32xf32>
    %144 = arith.addf %138, %143 : vector<8x32xf32>
    %145 = vector.extract_strided_slice %0 {offsets = [0, 7], sizes = [8, 1], strides = [1, 1]} : vector<8x16xf32> to vector<8x1xf32>
    %146 = vector.extract_strided_slice %1 {offsets = [2, 0], sizes = [1, 32], strides = [1, 1]} : vector<3x32xf32> to vector<1x32xf32>
    %147 = vector.broadcast %145 : vector<8x1xf32> to vector<8x32xf32>
    %148 = vector.broadcast %146 : vector<1x32xf32> to vector<8x32xf32>
    %149 = arith.mulf %147, %148 : vector<8x32xf32>
    %150 = arith.addf %144, %149 : vector<8x32xf32>
    %cst_20 = arith.constant 0.000000e+00 : f32
    %151 = vector.broadcast %cst_20 : f32 to vector<8x32xf32>
    %152 = arith.maximumf %150, %151 : vector<8x32xf32>
    %c0_21 = arith.constant 0 : index
    %c224 = arith.constant 224 : index
    %153 = vector.load %arg11[%c0_21, %c224] : memref<8x576xf32, #tpu.memory_space<vmem>>, vector<8x32xf32>
    tpu.vector_store %arg11[%c0_21, %c224], %152 {strides = array<i32>} : memref<8x576xf32, #tpu.memory_space<vmem>>, vector<8x32xf32>,
    %154 = vector.extract_strided_slice %0 {offsets = [0, 7], sizes = [8, 1], strides = [1, 1]} : vector<8x16xf32> to vector<8x1xf32>
    %155 = vector.extract_strided_slice %1 {offsets = [1, 0], sizes = [1, 32], strides = [1, 1]} : vector<3x32xf32> to vector<1x32xf32>
    %156 = vector.broadcast %154 : vector<8x1xf32> to vector<8x32xf32>
    %157 = vector.broadcast %155 : vector<1x32xf32> to vector<8x32xf32>
    %158 = arith.mulf %156, %157 : vector<8x32xf32>
    %159 = vector.broadcast %2 : vector<1x32xf32> to vector<8x32xf32>
    %160 = arith.addf %158, %159 : vector<8x32xf32>
    %161 = vector.extract_strided_slice %0 {offsets = [0, 6], sizes = [8, 1], strides = [1, 1]} : vector<8x16xf32> to vector<8x1xf32>
    %162 = vector.extract_strided_slice %1 {offsets = [0, 0], sizes = [1, 32], strides = [1, 1]} : vector<3x32xf32> to vector<1x32xf32>
    %163 = vector.broadcast %161 : vector<8x1xf32> to vector<8x32xf32>
    %164 = vector.broadcast %162 : vector<1x32xf32> to vector<8x32xf32>
    %165 = arith.mulf %163, %164 : vector<8x32xf32>
    %166 = arith.addf %160, %165 : vector<8x32xf32>
    %167 = vector.extract_strided_slice %0 {offsets = [0, 8], sizes = [8, 1], strides = [1, 1]} : vector<8x16xf32> to vector<8x1xf32>
    %168 = vector.extract_strided_slice %1 {offsets = [2, 0], sizes = [1, 32], strides = [1, 1]} : vector<3x32xf32> to vector<1x32xf32>
    %169 = vector.broadcast %167 : vector<8x1xf32> to vector<8x32xf32>
    %170 = vector.broadcast %168 : vector<1x32xf32> to vector<8x32xf32>
    %171 = arith.mulf %169, %170 : vector<8x32xf32>
    %172 = arith.addf %166, %171 : vector<8x32xf32>
    %cst_22 = arith.constant 0.000000e+00 : f32
    %173 = vector.broadcast %cst_22 : f32 to vector<8x32xf32>
    %174 = arith.maximumf %172, %173 : vector<8x32xf32>
    %c0_23 = arith.constant 0 : index
    %c256 = arith.constant 256 : index
    %175 = vector.load %arg11[%c0_23, %c256] : memref<8x576xf32, #tpu.memory_space<vmem>>, vector<8x32xf32>
    tpu.vector_store %arg11[%c0_23, %c256], %174 {strides = array<i32>} : memref<8x576xf32, #tpu.memory_space<vmem>>, vector<8x32xf32>,
    %176 = vector.extract_strided_slice %0 {offsets = [0, 8], sizes = [8, 1], strides = [1, 1]} : vector<8x16xf32> to vector<8x1xf32>
    %177 = vector.extract_strided_slice %1 {offsets = [1, 0], sizes = [1, 32], strides = [1, 1]} : vector<3x32xf32> to vector<1x32xf32>
    %178 = vector.broadcast %176 : vector<8x1xf32> to vector<8x32xf32>
    %179 = vector.broadcast %177 : vector<1x32xf32> to vector<8x32xf32>
    %180 = arith.mulf %178, %179 : vector<8x32xf32>
    %181 = vector.broadcast %2 : vector<1x32xf32> to vector<8x32xf32>
    %182 = arith.addf %180, %181 : vector<8x32xf32>
    %183 = vector.extract_strided_slice %0 {offsets = [0, 7], sizes = [8, 1], strides = [1, 1]} : vector<8x16xf32> to vector<8x1xf32>
    %184 = vector.extract_strided_slice %1 {offsets = [0, 0], sizes = [1, 32], strides = [1, 1]} : vector<3x32xf32> to vector<1x32xf32>
    %185 = vector.broadcast %183 : vector<8x1xf32> to vector<8x32xf32>
    %186 = vector.broadcast %184 : vector<1x32xf32> to vector<8x32xf32>
    %187 = arith.mulf %185, %186 : vector<8x32xf32>
    %188 = arith.addf %182, %187 : vector<8x32xf32>
    %189 = vector.extract_strided_slice %0 {offsets = [0, 9], sizes = [8, 1], strides = [1, 1]} : vector<8x16xf32> to vector<8x1xf32>
    %190 = vector.extract_strided_slice %1 {offsets = [2, 0], sizes = [1, 32], strides = [1, 1]} : vector<3x32xf32> to vector<1x32xf32>
    %191 = vector.broadcast %189 : vector<8x1xf32> to vector<8x32xf32>
    %192 = vector.broadcast %190 : vector<1x32xf32> to vector<8x32xf32>
    %193 = arith.mulf %191, %192 : vector<8x32xf32>
    %194 = arith.addf %188, %193 : vector<8x32xf32>
    %cst_24 = arith.constant 0.000000e+00 : f32
    %195 = vector.broadcast %cst_24 : f32 to vector<8x32xf32>
    %196 = arith.maximumf %194, %195 : vector<8x32xf32>
    %c0_25 = arith.constant 0 : index
    %c288 = arith.constant 288 : index
    %197 = vector.load %arg11[%c0_25, %c288] : memref<8x576xf32, #tpu.memory_space<vmem>>, vector<8x32xf32>
    tpu.vector_store %arg11[%c0_25, %c288], %196 {strides = array<i32>} : memref<8x576xf32, #tpu.memory_space<vmem>>, vector<8x32xf32>,
    %198 = vector.extract_strided_slice %0 {offsets = [0, 9], sizes = [8, 1], strides = [1, 1]} : vector<8x16xf32> to vector<8x1xf32>
    %199 = vector.extract_strided_slice %1 {offsets = [1, 0], sizes = [1, 32], strides = [1, 1]} : vector<3x32xf32> to vector<1x32xf32>
    %200 = vector.broadcast %198 : vector<8x1xf32> to vector<8x32xf32>
    %201 = vector.broadcast %199 : vector<1x32xf32> to vector<8x32xf32>
    %202 = arith.mulf %200, %201 : vector<8x32xf32>
    %203 = vector.broadcast %2 : vector<1x32xf32> to vector<8x32xf32>
    %204 = arith.addf %202, %203 : vector<8x32xf32>
    %205 = vector.extract_strided_slice %0 {offsets = [0, 8], sizes = [8, 1], strides = [1, 1]} : vector<8x16xf32> to vector<8x1xf32>
    %206 = vector.extract_strided_slice %1 {offsets = [0, 0], sizes = [1, 32], strides = [1, 1]} : vector<3x32xf32> to vector<1x32xf32>
    %207 = vector.broadcast %205 : vector<8x1xf32> to vector<8x32xf32>
    %208 = vector.broadcast %206 : vector<1x32xf32> to vector<8x32xf32>
    %209 = arith.mulf %207, %208 : vector<8x32xf32>
    %210 = arith.addf %204, %209 : vector<8x32xf32>
    %211 = vector.extract_strided_slice %0 {offsets = [0, 10], sizes = [8, 1], strides = [1, 1]} : vector<8x16xf32> to vector<8x1xf32>
    %212 = vector.extract_strided_slice %1 {offsets = [2, 0], sizes = [1, 32], strides = [1, 1]} : vector<3x32xf32> to vector<1x32xf32>
    %213 = vector.broadcast %211 : vector<8x1xf32> to vector<8x32xf32>
    %214 = vector.broadcast %212 : vector<1x32xf32> to vector<8x32xf32>
    %215 = arith.mulf %213, %214 : vector<8x32xf32>
    %216 = arith.addf %210, %215 : vector<8x32xf32>
    %cst_26 = arith.constant 0.000000e+00 : f32
    %217 = vector.broadcast %cst_26 : f32 to vector<8x32xf32>
    %218 = arith.maximumf %216, %217 : vector<8x32xf32>
    %c0_27 = arith.constant 0 : index
    %c320 = arith.constant 320 : index
    %219 = vector.load %arg11[%c0_27, %c320] : memref<8x576xf32, #tpu.memory_space<vmem>>, vector<8x32xf32>
    tpu.vector_store %arg11[%c0_27, %c320], %218 {strides = array<i32>} : memref<8x576xf32, #tpu.memory_space<vmem>>, vector<8x32xf32>,
    %220 = vector.extract_strided_slice %0 {offsets = [0, 10], sizes = [8, 1], strides = [1, 1]} : vector<8x16xf32> to vector<8x1xf32>
    %221 = vector.extract_strided_slice %1 {offsets = [1, 0], sizes = [1, 32], strides = [1, 1]} : vector<3x32xf32> to vector<1x32xf32>
    %222 = vector.broadcast %220 : vector<8x1xf32> to vector<8x32xf32>
    %223 = vector.broadcast %221 : vector<1x32xf32> to vector<8x32xf32>
    %224 = arith.mulf %222, %223 : vector<8x32xf32>
    %225 = vector.broadcast %2 : vector<1x32xf32> to vector<8x32xf32>
    %226 = arith.addf %224, %225 : vector<8x32xf32>
    %227 = vector.extract_strided_slice %0 {offsets = [0, 9], sizes = [8, 1], strides = [1, 1]} : vector<8x16xf32> to vector<8x1xf32>
    %228 = vector.extract_strided_slice %1 {offsets = [0, 0], sizes = [1, 32], strides = [1, 1]} : vector<3x32xf32> to vector<1x32xf32>
    %229 = vector.broadcast %227 : vector<8x1xf32> to vector<8x32xf32>
    %230 = vector.broadcast %228 : vector<1x32xf32> to vector<8x32xf32>
    %231 = arith.mulf %229, %230 : vector<8x32xf32>
    %232 = arith.addf %226, %231 : vector<8x32xf32>
    %233 = vector.extract_strided_slice %0 {offsets = [0, 11], sizes = [8, 1], strides = [1, 1]} : vector<8x16xf32> to vector<8x1xf32>
    %234 = vector.extract_strided_slice %1 {offsets = [2, 0], sizes = [1, 32], strides = [1, 1]} : vector<3x32xf32> to vector<1x32xf32>
    %235 = vector.broadcast %233 : vector<8x1xf32> to vector<8x32xf32>
    %236 = vector.broadcast %234 : vector<1x32xf32> to vector<8x32xf32>
    %237 = arith.mulf %235, %236 : vector<8x32xf32>
    %238 = arith.addf %232, %237 : vector<8x32xf32>
    %cst_28 = arith.constant 0.000000e+00 : f32
    %239 = vector.broadcast %cst_28 : f32 to vector<8x32xf32>
    %240 = arith.maximumf %238, %239 : vector<8x32xf32>
    %c0_29 = arith.constant 0 : index
    %c352 = arith.constant 352 : index
    %241 = vector.load %arg11[%c0_29, %c352] : memref<8x576xf32, #tpu.memory_space<vmem>>, vector<8x32xf32>
    tpu.vector_store %arg11[%c0_29, %c352], %240 {strides = array<i32>} : memref<8x576xf32, #tpu.memory_space<vmem>>, vector<8x32xf32>,
    %242 = vector.extract_strided_slice %0 {offsets = [0, 11], sizes = [8, 1], strides = [1, 1]} : vector<8x16xf32> to vector<8x1xf32>
    %243 = vector.extract_strided_slice %1 {offsets = [1, 0], sizes = [1, 32], strides = [1, 1]} : vector<3x32xf32> to vector<1x32xf32>
    %244 = vector.broadcast %242 : vector<8x1xf32> to vector<8x32xf32>
    %245 = vector.broadcast %243 : vector<1x32xf32> to vector<8x32xf32>
    %246 = arith.mulf %244, %245 : vector<8x32xf32>
    %247 = vector.broadcast %2 : vector<1x32xf32> to vector<8x32xf32>
    %248 = arith.addf %246, %247 : vector<8x32xf32>
    %249 = vector.extract_strided_slice %0 {offsets = [0, 10], sizes = [8, 1], strides = [1, 1]} : vector<8x16xf32> to vector<8x1xf32>
    %250 = vector.extract_strided_slice %1 {offsets = [0, 0], sizes = [1, 32], strides = [1, 1]} : vector<3x32xf32> to vector<1x32xf32>
    %251 = vector.broadcast %249 : vector<8x1xf32> to vector<8x32xf32>
    %252 = vector.broadcast %250 : vector<1x32xf32> to vector<8x32xf32>
    %253 = arith.mulf %251, %252 : vector<8x32xf32>
    %254 = arith.addf %248, %253 : vector<8x32xf32>
    %255 = vector.extract_strided_slice %0 {offsets = [0, 12], sizes = [8, 1], strides = [1, 1]} : vector<8x16xf32> to vector<8x1xf32>
    %256 = vector.extract_strided_slice %1 {offsets = [2, 0], sizes = [1, 32], strides = [1, 1]} : vector<3x32xf32> to vector<1x32xf32>
    %257 = vector.broadcast %255 : vector<8x1xf32> to vector<8x32xf32>
    %258 = vector.broadcast %256 : vector<1x32xf32> to vector<8x32xf32>
    %259 = arith.mulf %257, %258 : vector<8x32xf32>
    %260 = arith.addf %254, %259 : vector<8x32xf32>
    %cst_30 = arith.constant 0.000000e+00 : f32
    %261 = vector.broadcast %cst_30 : f32 to vector<8x32xf32>
    %262 = arith.maximumf %260, %261 : vector<8x32xf32>
    %c0_31 = arith.constant 0 : index
    %c384 = arith.constant 384 : index
    %263 = vector.load %arg11[%c0_31, %c384] : memref<8x576xf32, #tpu.memory_space<vmem>>, vector<8x32xf32>
    tpu.vector_store %arg11[%c0_31, %c384], %262 {strides = array<i32>} : memref<8x576xf32, #tpu.memory_space<vmem>>, vector<8x32xf32>,
    %264 = vector.extract_strided_slice %0 {offsets = [0, 12], sizes = [8, 1], strides = [1, 1]} : vector<8x16xf32> to vector<8x1xf32>
    %265 = vector.extract_strided_slice %1 {offsets = [1, 0], sizes = [1, 32], strides = [1, 1]} : vector<3x32xf32> to vector<1x32xf32>
    %266 = vector.broadcast %264 : vector<8x1xf32> to vector<8x32xf32>
    %267 = vector.broadcast %265 : vector<1x32xf32> to vector<8x32xf32>
    %268 = arith.mulf %266, %267 : vector<8x32xf32>
    %269 = vector.broadcast %2 : vector<1x32xf32> to vector<8x32xf32>
    %270 = arith.addf %268, %269 : vector<8x32xf32>
    %271 = vector.extract_strided_slice %0 {offsets = [0, 11], sizes = [8, 1], strides = [1, 1]} : vector<8x16xf32> to vector<8x1xf32>
    %272 = vector.extract_strided_slice %1 {offsets = [0, 0], sizes = [1, 32], strides = [1, 1]} : vector<3x32xf32> to vector<1x32xf32>
    %273 = vector.broadcast %271 : vector<8x1xf32> to vector<8x32xf32>
    %274 = vector.broadcast %272 : vector<1x32xf32> to vector<8x32xf32>
    %275 = arith.mulf %273, %274 : vector<8x32xf32>
    %276 = arith.addf %270, %275 : vector<8x32xf32>
    %277 = vector.extract_strided_slice %0 {offsets = [0, 13], sizes = [8, 1], strides = [1, 1]} : vector<8x16xf32> to vector<8x1xf32>
    %278 = vector.extract_strided_slice %1 {offsets = [2, 0], sizes = [1, 32], strides = [1, 1]} : vector<3x32xf32> to vector<1x32xf32>
    %279 = vector.broadcast %277 : vector<8x1xf32> to vector<8x32xf32>
    %280 = vector.broadcast %278 : vector<1x32xf32> to vector<8x32xf32>
    %281 = arith.mulf %279, %280 : vector<8x32xf32>
    %282 = arith.addf %276, %281 : vector<8x32xf32>
    %cst_32 = arith.constant 0.000000e+00 : f32
    %283 = vector.broadcast %cst_32 : f32 to vector<8x32xf32>
    %284 = arith.maximumf %282, %283 : vector<8x32xf32>
    %c0_33 = arith.constant 0 : index
    %c416 = arith.constant 416 : index
    %285 = vector.load %arg11[%c0_33, %c416] : memref<8x576xf32, #tpu.memory_space<vmem>>, vector<8x32xf32>
    tpu.vector_store %arg11[%c0_33, %c416], %284 {strides = array<i32>} : memref<8x576xf32, #tpu.memory_space<vmem>>, vector<8x32xf32>,
    %286 = vector.extract_strided_slice %0 {offsets = [0, 13], sizes = [8, 1], strides = [1, 1]} : vector<8x16xf32> to vector<8x1xf32>
    %287 = vector.extract_strided_slice %1 {offsets = [1, 0], sizes = [1, 32], strides = [1, 1]} : vector<3x32xf32> to vector<1x32xf32>
    %288 = vector.broadcast %286 : vector<8x1xf32> to vector<8x32xf32>
    %289 = vector.broadcast %287 : vector<1x32xf32> to vector<8x32xf32>
    %290 = arith.mulf %288, %289 : vector<8x32xf32>
    %291 = vector.broadcast %2 : vector<1x32xf32> to vector<8x32xf32>
    %292 = arith.addf %290, %291 : vector<8x32xf32>
    %293 = vector.extract_strided_slice %0 {offsets = [0, 12], sizes = [8, 1], strides = [1, 1]} : vector<8x16xf32> to vector<8x1xf32>
    %294 = vector.extract_strided_slice %1 {offsets = [0, 0], sizes = [1, 32], strides = [1, 1]} : vector<3x32xf32> to vector<1x32xf32>
    %295 = vector.broadcast %293 : vector<8x1xf32> to vector<8x32xf32>
    %296 = vector.broadcast %294 : vector<1x32xf32> to vector<8x32xf32>
    %297 = arith.mulf %295, %296 : vector<8x32xf32>
    %298 = arith.addf %292, %297 : vector<8x32xf32>
    %299 = vector.extract_strided_slice %0 {offsets = [0, 14], sizes = [8, 1], strides = [1, 1]} : vector<8x16xf32> to vector<8x1xf32>
    %300 = vector.extract_strided_slice %1 {offsets = [2, 0], sizes = [1, 32], strides = [1, 1]} : vector<3x32xf32> to vector<1x32xf32>
    %301 = vector.broadcast %299 : vector<8x1xf32> to vector<8x32xf32>
    %302 = vector.broadcast %300 : vector<1x32xf32> to vector<8x32xf32>
    %303 = arith.mulf %301, %302 : vector<8x32xf32>
    %304 = arith.addf %298, %303 : vector<8x32xf32>
    %cst_34 = arith.constant 0.000000e+00 : f32
    %305 = vector.broadcast %cst_34 : f32 to vector<8x32xf32>
    %306 = arith.maximumf %304, %305 : vector<8x32xf32>
    %c0_35 = arith.constant 0 : index
    %c448 = arith.constant 448 : index
    %307 = vector.load %arg11[%c0_35, %c448] : memref<8x576xf32, #tpu.memory_space<vmem>>, vector<8x32xf32>
    tpu.vector_store %arg11[%c0_35, %c448], %306 {strides = array<i32>} : memref<8x576xf32, #tpu.memory_space<vmem>>, vector<8x32xf32>,
    %308 = vector.extract_strided_slice %0 {offsets = [0, 14], sizes = [8, 1], strides = [1, 1]} : vector<8x16xf32> to vector<8x1xf32>
    %309 = vector.extract_strided_slice %1 {offsets = [1, 0], sizes = [1, 32], strides = [1, 1]} : vector<3x32xf32> to vector<1x32xf32>
    %310 = vector.broadcast %308 : vector<8x1xf32> to vector<8x32xf32>
    %311 = vector.broadcast %309 : vector<1x32xf32> to vector<8x32xf32>
    %312 = arith.mulf %310, %311 : vector<8x32xf32>
    %313 = vector.broadcast %2 : vector<1x32xf32> to vector<8x32xf32>
    %314 = arith.addf %312, %313 : vector<8x32xf32>
    %315 = vector.extract_strided_slice %0 {offsets = [0, 13], sizes = [8, 1], strides = [1, 1]} : vector<8x16xf32> to vector<8x1xf32>
    %316 = vector.extract_strided_slice %1 {offsets = [0, 0], sizes = [1, 32], strides = [1, 1]} : vector<3x32xf32> to vector<1x32xf32>
    %317 = vector.broadcast %315 : vector<8x1xf32> to vector<8x32xf32>
    %318 = vector.broadcast %316 : vector<1x32xf32> to vector<8x32xf32>
    %319 = arith.mulf %317, %318 : vector<8x32xf32>
    %320 = arith.addf %314, %319 : vector<8x32xf32>
    %321 = vector.extract_strided_slice %0 {offsets = [0, 15], sizes = [8, 1], strides = [1, 1]} : vector<8x16xf32> to vector<8x1xf32>
    %322 = vector.extract_strided_slice %1 {offsets = [2, 0], sizes = [1, 32], strides = [1, 1]} : vector<3x32xf32> to vector<1x32xf32>
    %323 = vector.broadcast %321 : vector<8x1xf32> to vector<8x32xf32>
    %324 = vector.broadcast %322 : vector<1x32xf32> to vector<8x32xf32>
    %325 = arith.mulf %323, %324 : vector<8x32xf32>
    %326 = arith.addf %320, %325 : vector<8x32xf32>
    %cst_36 = arith.constant 0.000000e+00 : f32
    %327 = vector.broadcast %cst_36 : f32 to vector<8x32xf32>
    %328 = arith.maximumf %326, %327 : vector<8x32xf32>
    %c0_37 = arith.constant 0 : index
    %c480 = arith.constant 480 : index
    %329 = vector.load %arg11[%c0_37, %c480] : memref<8x576xf32, #tpu.memory_space<vmem>>, vector<8x32xf32>
    tpu.vector_store %arg11[%c0_37, %c480], %328 {strides = array<i32>} : memref<8x576xf32, #tpu.memory_space<vmem>>, vector<8x32xf32>,
    %330 = vector.extract_strided_slice %0 {offsets = [0, 15], sizes = [8, 1], strides = [1, 1]} : vector<8x16xf32> to vector<8x1xf32>
    %331 = vector.extract_strided_slice %1 {offsets = [1, 0], sizes = [1, 32], strides = [1, 1]} : vector<3x32xf32> to vector<1x32xf32>
    %332 = vector.broadcast %330 : vector<8x1xf32> to vector<8x32xf32>
    %333 = vector.broadcast %331 : vector<1x32xf32> to vector<8x32xf32>
    %334 = arith.mulf %332, %333 : vector<8x32xf32>
    %335 = vector.broadcast %2 : vector<1x32xf32> to vector<8x32xf32>
    %336 = arith.addf %334, %335 : vector<8x32xf32>
    %337 = vector.extract_strided_slice %0 {offsets = [0, 14], sizes = [8, 1], strides = [1, 1]} : vector<8x16xf32> to vector<8x1xf32>
    %338 = vector.extract_strided_slice %1 {offsets = [0, 0], sizes = [1, 32], strides = [1, 1]} : vector<3x32xf32> to vector<1x32xf32>
    %339 = vector.broadcast %337 : vector<8x1xf32> to vector<8x32xf32>
    %340 = vector.broadcast %338 : vector<1x32xf32> to vector<8x32xf32>
    %341 = arith.mulf %339, %340 : vector<8x32xf32>
    %342 = arith.addf %336, %341 : vector<8x32xf32>
    %cst_38 = arith.constant 0.000000e+00 : f32
    %343 = vector.broadcast %cst_38 : f32 to vector<8x32xf32>
    %344 = arith.maximumf %342, %343 : vector<8x32xf32>
    %c0_39 = arith.constant 0 : index
    %c512 = arith.constant 512 : index
    %345 = vector.load %arg11[%c0_39, %c512] : memref<8x576xf32, #tpu.memory_space<vmem>>, vector<8x32xf32>
    tpu.vector_store %arg11[%c0_39, %c512], %344 {strides = array<i32>} : memref<8x576xf32, #tpu.memory_space<vmem>>, vector<8x32xf32>,
    %c0_40 = arith.constant 0 : index
    %c0_41 = arith.constant 0 : index
    %346 = vector.load %arg4[%c0_40, %c0_41] : memref<96x64xf32, #tpu.memory_space<vmem>>, vector<96x64xf32>
    %c0_42 = arith.constant 0 : index
    %c0_43 = arith.constant 0 : index
    %347 = vector.load %arg5[%c0_42, %c0_43] : memref<1x64xf32, #tpu.memory_space<vmem>>, vector<1x64xf32>
    %cst_44 = arith.constant 0.000000e+00 : f32
    %348 = vector.broadcast %cst_44 : f32 to vector<8x128xf32>
    %c0_45 = arith.constant 0 : index
    %c0_46 = arith.constant 0 : index
    %349 = vector.load %arg11[%c0_45, %c0_46] : memref<8x576xf32, #tpu.memory_space<vmem>>, vector<8x96xf32>
    %cst_47 = arith.constant dense<0.000000e+00> : vector<8x64xf32>
    %350 = tpu.matmul %349, %346, %cst_47 {dimension_numbers = #tpu.dot_dimension_numbers<[1], [0], [0], [1], [0, 0, 1, 1], [], []>} : vector<8x96xf32>, vector<96x64xf32>, vector<8x64xf32> -> vector<8x64xf32>
    %351 = vector.broadcast %347 : vector<1x64xf32> to vector<8x64xf32>
    %352 = arith.addf %350, %351 : vector<8x64xf32>
    %cst_48 = arith.constant 0.000000e+00 : f32
    %353 = vector.broadcast %cst_48 : f32 to vector<8x64xf32>
    %354 = arith.maximumf %352, %353 : vector<8x64xf32>
    %c0_49 = arith.constant 0 : index
    %c0_50 = arith.constant 0 : index
    %355 = vector.load %arg6[%c0_49, %c0_50] : memref<1024x128xf32, #tpu.memory_space<vmem>>, vector<64x128xf32>
    %cst_51 = arith.constant dense<0.000000e+00> : vector<8x128xf32>
    %356 = tpu.matmul %354, %355, %cst_51 {dimension_numbers = #tpu.dot_dimension_numbers<[1], [0], [0], [1], [0, 0, 1, 1], [], []>} : vector<8x64xf32>, vector<64x128xf32>, vector<8x128xf32> -> vector<8x128xf32>
    %357 = arith.addf %348, %356 : vector<8x128xf32>
    %c0_52 = arith.constant 0 : index
    %c32_53 = arith.constant 32 : index
    %358 = vector.load %arg11[%c0_52, %c32_53] : memref<8x576xf32, #tpu.memory_space<vmem>>, vector<8x96xf32>
    %cst_54 = arith.constant dense<0.000000e+00> : vector<8x64xf32>
    %359 = tpu.matmul %358, %346, %cst_54 {dimension_numbers = #tpu.dot_dimension_numbers<[1], [0], [0], [1], [0, 0, 1, 1], [], []>} : vector<8x96xf32>, vector<96x64xf32>, vector<8x64xf32> -> vector<8x64xf32>
    %360 = vector.broadcast %347 : vector<1x64xf32> to vector<8x64xf32>
    %361 = arith.addf %359, %360 : vector<8x64xf32>
    %cst_55 = arith.constant 0.000000e+00 : f32
    %362 = vector.broadcast %cst_55 : f32 to vector<8x64xf32>
    %363 = arith.maximumf %361, %362 : vector<8x64xf32>
    %c64_56 = arith.constant 64 : index
    %c0_57 = arith.constant 0 : index
    %364 = vector.load %arg6[%c64_56, %c0_57] : memref<1024x128xf32, #tpu.memory_space<vmem>>, vector<64x128xf32>
    %cst_58 = arith.constant dense<0.000000e+00> : vector<8x128xf32>
    %365 = tpu.matmul %363, %364, %cst_58 {dimension_numbers = #tpu.dot_dimension_numbers<[1], [0], [0], [1], [0, 0, 1, 1], [], []>} : vector<8x64xf32>, vector<64x128xf32>, vector<8x128xf32> -> vector<8x128xf32>
    %366 = arith.addf %357, %365 : vector<8x128xf32>
    %c0_59 = arith.constant 0 : index
    %c64_60 = arith.constant 64 : index
    %367 = vector.load %arg11[%c0_59, %c64_60] : memref<8x576xf32, #tpu.memory_space<vmem>>, vector<8x96xf32>
    %cst_61 = arith.constant dense<0.000000e+00> : vector<8x64xf32>
    %368 = tpu.matmul %367, %346, %cst_61 {dimension_numbers = #tpu.dot_dimension_numbers<[1], [0], [0], [1], [0, 0, 1, 1], [], []>} : vector<8x96xf32>, vector<96x64xf32>, vector<8x64xf32> -> vector<8x64xf32>
    %369 = vector.broadcast %347 : vector<1x64xf32> to vector<8x64xf32>
    %370 = arith.addf %368, %369 : vector<8x64xf32>
    %cst_62 = arith.constant 0.000000e+00 : f32
    %371 = vector.broadcast %cst_62 : f32 to vector<8x64xf32>
    %372 = arith.maximumf %370, %371 : vector<8x64xf32>
    %c128_63 = arith.constant 128 : index
    %c0_64 = arith.constant 0 : index
    %373 = vector.load %arg6[%c128_63, %c0_64] : memref<1024x128xf32, #tpu.memory_space<vmem>>, vector<64x128xf32>
    %cst_65 = arith.constant dense<0.000000e+00> : vector<8x128xf32>
    %374 = tpu.matmul %372, %373, %cst_65 {dimension_numbers = #tpu.dot_dimension_numbers<[1], [0], [0], [1], [0, 0, 1, 1], [], []>} : vector<8x64xf32>, vector<64x128xf32>, vector<8x128xf32> -> vector<8x128xf32>
    %375 = arith.addf %366, %374 : vector<8x128xf32>
    %c0_66 = arith.constant 0 : index
    %c96_67 = arith.constant 96 : index
    %376 = vector.load %arg11[%c0_66, %c96_67] : memref<8x576xf32, #tpu.memory_space<vmem>>, vector<8x96xf32>
    %cst_68 = arith.constant dense<0.000000e+00> : vector<8x64xf32>
    %377 = tpu.matmul %376, %346, %cst_68 {dimension_numbers = #tpu.dot_dimension_numbers<[1], [0], [0], [1], [0, 0, 1, 1], [], []>} : vector<8x96xf32>, vector<96x64xf32>, vector<8x64xf32> -> vector<8x64xf32>
    %378 = vector.broadcast %347 : vector<1x64xf32> to vector<8x64xf32>
    %379 = arith.addf %377, %378 : vector<8x64xf32>
    %cst_69 = arith.constant 0.000000e+00 : f32
    %380 = vector.broadcast %cst_69 : f32 to vector<8x64xf32>
    %381 = arith.maximumf %379, %380 : vector<8x64xf32>
    %c192_70 = arith.constant 192 : index
    %c0_71 = arith.constant 0 : index
    %382 = vector.load %arg6[%c192_70, %c0_71] : memref<1024x128xf32, #tpu.memory_space<vmem>>, vector<64x128xf32>
    %cst_72 = arith.constant dense<0.000000e+00> : vector<8x128xf32>
    %383 = tpu.matmul %381, %382, %cst_72 {dimension_numbers = #tpu.dot_dimension_numbers<[1], [0], [0], [1], [0, 0, 1, 1], [], []>} : vector<8x64xf32>, vector<64x128xf32>, vector<8x128xf32> -> vector<8x128xf32>
    %384 = arith.addf %375, %383 : vector<8x128xf32>
    %c0_73 = arith.constant 0 : index
    %c128_74 = arith.constant 128 : index
    %385 = vector.load %arg11[%c0_73, %c128_74] : memref<8x576xf32, #tpu.memory_space<vmem>>, vector<8x96xf32>
    %cst_75 = arith.constant dense<0.000000e+00> : vector<8x64xf32>
    %386 = tpu.matmul %385, %346, %cst_75 {dimension_numbers = #tpu.dot_dimension_numbers<[1], [0], [0], [1], [0, 0, 1, 1], [], []>} : vector<8x96xf32>, vector<96x64xf32>, vector<8x64xf32> -> vector<8x64xf32>
    %387 = vector.broadcast %347 : vector<1x64xf32> to vector<8x64xf32>
    %388 = arith.addf %386, %387 : vector<8x64xf32>
    %cst_76 = arith.constant 0.000000e+00 : f32
    %389 = vector.broadcast %cst_76 : f32 to vector<8x64xf32>
    %390 = arith.maximumf %388, %389 : vector<8x64xf32>
    %c256_77 = arith.constant 256 : index
    %c0_78 = arith.constant 0 : index
    %391 = vector.load %arg6[%c256_77, %c0_78] : memref<1024x128xf32, #tpu.memory_space<vmem>>, vector<64x128xf32>
    %cst_79 = arith.constant dense<0.000000e+00> : vector<8x128xf32>
    %392 = tpu.matmul %390, %391, %cst_79 {dimension_numbers = #tpu.dot_dimension_numbers<[1], [0], [0], [1], [0, 0, 1, 1], [], []>} : vector<8x64xf32>, vector<64x128xf32>, vector<8x128xf32> -> vector<8x128xf32>
    %393 = arith.addf %384, %392 : vector<8x128xf32>
    %c0_80 = arith.constant 0 : index
    %c160_81 = arith.constant 160 : index
    %394 = vector.load %arg11[%c0_80, %c160_81] : memref<8x576xf32, #tpu.memory_space<vmem>>, vector<8x96xf32>
    %cst_82 = arith.constant dense<0.000000e+00> : vector<8x64xf32>
    %395 = tpu.matmul %394, %346, %cst_82 {dimension_numbers = #tpu.dot_dimension_numbers<[1], [0], [0], [1], [0, 0, 1, 1], [], []>} : vector<8x96xf32>, vector<96x64xf32>, vector<8x64xf32> -> vector<8x64xf32>
    %396 = vector.broadcast %347 : vector<1x64xf32> to vector<8x64xf32>
    %397 = arith.addf %395, %396 : vector<8x64xf32>
    %cst_83 = arith.constant 0.000000e+00 : f32
    %398 = vector.broadcast %cst_83 : f32 to vector<8x64xf32>
    %399 = arith.maximumf %397, %398 : vector<8x64xf32>
    %c320_84 = arith.constant 320 : index
    %c0_85 = arith.constant 0 : index
    %400 = vector.load %arg6[%c320_84, %c0_85] : memref<1024x128xf32, #tpu.memory_space<vmem>>, vector<64x128xf32>
    %cst_86 = arith.constant dense<0.000000e+00> : vector<8x128xf32>
    %401 = tpu.matmul %399, %400, %cst_86 {dimension_numbers = #tpu.dot_dimension_numbers<[1], [0], [0], [1], [0, 0, 1, 1], [], []>} : vector<8x64xf32>, vector<64x128xf32>, vector<8x128xf32> -> vector<8x128xf32>
    %402 = arith.addf %393, %401 : vector<8x128xf32>
    %c0_87 = arith.constant 0 : index
    %c192_88 = arith.constant 192 : index
    %403 = vector.load %arg11[%c0_87, %c192_88] : memref<8x576xf32, #tpu.memory_space<vmem>>, vector<8x96xf32>
    %cst_89 = arith.constant dense<0.000000e+00> : vector<8x64xf32>
    %404 = tpu.matmul %403, %346, %cst_89 {dimension_numbers = #tpu.dot_dimension_numbers<[1], [0], [0], [1], [0, 0, 1, 1], [], []>} : vector<8x96xf32>, vector<96x64xf32>, vector<8x64xf32> -> vector<8x64xf32>
    %405 = vector.broadcast %347 : vector<1x64xf32> to vector<8x64xf32>
    %406 = arith.addf %404, %405 : vector<8x64xf32>
    %cst_90 = arith.constant 0.000000e+00 : f32
    %407 = vector.broadcast %cst_90 : f32 to vector<8x64xf32>
    %408 = arith.maximumf %406, %407 : vector<8x64xf32>
    %c384_91 = arith.constant 384 : index
    %c0_92 = arith.constant 0 : index
    %409 = vector.load %arg6[%c384_91, %c0_92] : memref<1024x128xf32, #tpu.memory_space<vmem>>, vector<64x128xf32>
    %cst_93 = arith.constant dense<0.000000e+00> : vector<8x128xf32>
    %410 = tpu.matmul %408, %409, %cst_93 {dimension_numbers = #tpu.dot_dimension_numbers<[1], [0], [0], [1], [0, 0, 1, 1], [], []>} : vector<8x64xf32>, vector<64x128xf32>, vector<8x128xf32> -> vector<8x128xf32>
    %411 = arith.addf %402, %410 : vector<8x128xf32>
    %c0_94 = arith.constant 0 : index
    %c224_95 = arith.constant 224 : index
    %412 = vector.load %arg11[%c0_94, %c224_95] : memref<8x576xf32, #tpu.memory_space<vmem>>, vector<8x96xf32>
    %cst_96 = arith.constant dense<0.000000e+00> : vector<8x64xf32>
    %413 = tpu.matmul %412, %346, %cst_96 {dimension_numbers = #tpu.dot_dimension_numbers<[1], [0], [0], [1], [0, 0, 1, 1], [], []>} : vector<8x96xf32>, vector<96x64xf32>, vector<8x64xf32> -> vector<8x64xf32>
    %414 = vector.broadcast %347 : vector<1x64xf32> to vector<8x64xf32>
    %415 = arith.addf %413, %414 : vector<8x64xf32>
    %cst_97 = arith.constant 0.000000e+00 : f32
    %416 = vector.broadcast %cst_97 : f32 to vector<8x64xf32>
    %417 = arith.maximumf %415, %416 : vector<8x64xf32>
    %c448_98 = arith.constant 448 : index
    %c0_99 = arith.constant 0 : index
    %418 = vector.load %arg6[%c448_98, %c0_99] : memref<1024x128xf32, #tpu.memory_space<vmem>>, vector<64x128xf32>
    %cst_100 = arith.constant dense<0.000000e+00> : vector<8x128xf32>
    %419 = tpu.matmul %417, %418, %cst_100 {dimension_numbers = #tpu.dot_dimension_numbers<[1], [0], [0], [1], [0, 0, 1, 1], [], []>} : vector<8x64xf32>, vector<64x128xf32>, vector<8x128xf32> -> vector<8x128xf32>
    %420 = arith.addf %411, %419 : vector<8x128xf32>
    %c0_101 = arith.constant 0 : index
    %c256_102 = arith.constant 256 : index
    %421 = vector.load %arg11[%c0_101, %c256_102] : memref<8x576xf32, #tpu.memory_space<vmem>>, vector<8x96xf32>
    %cst_103 = arith.constant dense<0.000000e+00> : vector<8x64xf32>
    %422 = tpu.matmul %421, %346, %cst_103 {dimension_numbers = #tpu.dot_dimension_numbers<[1], [0], [0], [1], [0, 0, 1, 1], [], []>} : vector<8x96xf32>, vector<96x64xf32>, vector<8x64xf32> -> vector<8x64xf32>
    %423 = vector.broadcast %347 : vector<1x64xf32> to vector<8x64xf32>
    %424 = arith.addf %422, %423 : vector<8x64xf32>
    %cst_104 = arith.constant 0.000000e+00 : f32
    %425 = vector.broadcast %cst_104 : f32 to vector<8x64xf32>
    %426 = arith.maximumf %424, %425 : vector<8x64xf32>
    %c512_105 = arith.constant 512 : index
    %c0_106 = arith.constant 0 : index
    %427 = vector.load %arg6[%c512_105, %c0_106] : memref<1024x128xf32, #tpu.memory_space<vmem>>, vector<64x128xf32>
    %cst_107 = arith.constant dense<0.000000e+00> : vector<8x128xf32>
    %428 = tpu.matmul %426, %427, %cst_107 {dimension_numbers = #tpu.dot_dimension_numbers<[1], [0], [0], [1], [0, 0, 1, 1], [], []>} : vector<8x64xf32>, vector<64x128xf32>, vector<8x128xf32> -> vector<8x128xf32>
    %429 = arith.addf %420, %428 : vector<8x128xf32>
    %c0_108 = arith.constant 0 : index
    %c288_109 = arith.constant 288 : index
    %430 = vector.load %arg11[%c0_108, %c288_109] : memref<8x576xf32, #tpu.memory_space<vmem>>, vector<8x96xf32>
    %cst_110 = arith.constant dense<0.000000e+00> : vector<8x64xf32>
    %431 = tpu.matmul %430, %346, %cst_110 {dimension_numbers = #tpu.dot_dimension_numbers<[1], [0], [0], [1], [0, 0, 1, 1], [], []>} : vector<8x96xf32>, vector<96x64xf32>, vector<8x64xf32> -> vector<8x64xf32>
    %432 = vector.broadcast %347 : vector<1x64xf32> to vector<8x64xf32>
    %433 = arith.addf %431, %432 : vector<8x64xf32>
    %cst_111 = arith.constant 0.000000e+00 : f32
    %434 = vector.broadcast %cst_111 : f32 to vector<8x64xf32>
    %435 = arith.maximumf %433, %434 : vector<8x64xf32>
    %c576 = arith.constant 576 : index
    %c0_112 = arith.constant 0 : index
    %436 = vector.load %arg6[%c576, %c0_112] : memref<1024x128xf32, #tpu.memory_space<vmem>>, vector<64x128xf32>
    %cst_113 = arith.constant dense<0.000000e+00> : vector<8x128xf32>
    %437 = tpu.matmul %435, %436, %cst_113 {dimension_numbers = #tpu.dot_dimension_numbers<[1], [0], [0], [1], [0, 0, 1, 1], [], []>} : vector<8x64xf32>, vector<64x128xf32>, vector<8x128xf32> -> vector<8x128xf32>
    %438 = arith.addf %429, %437 : vector<8x128xf32>
    %c0_114 = arith.constant 0 : index
    %c320_115 = arith.constant 320 : index
    %439 = vector.load %arg11[%c0_114, %c320_115] : memref<8x576xf32, #tpu.memory_space<vmem>>, vector<8x96xf32>
    %cst_116 = arith.constant dense<0.000000e+00> : vector<8x64xf32>
    %440 = tpu.matmul %439, %346, %cst_116 {dimension_numbers = #tpu.dot_dimension_numbers<[1], [0], [0], [1], [0, 0, 1, 1], [], []>} : vector<8x96xf32>, vector<96x64xf32>, vector<8x64xf32> -> vector<8x64xf32>
    %441 = vector.broadcast %347 : vector<1x64xf32> to vector<8x64xf32>
    %442 = arith.addf %440, %441 : vector<8x64xf32>
    %cst_117 = arith.constant 0.000000e+00 : f32
    %443 = vector.broadcast %cst_117 : f32 to vector<8x64xf32>
    %444 = arith.maximumf %442, %443 : vector<8x64xf32>
    %c640 = arith.constant 640 : index
    %c0_118 = arith.constant 0 : index
    %445 = vector.load %arg6[%c640, %c0_118] : memref<1024x128xf32, #tpu.memory_space<vmem>>, vector<64x128xf32>
    %cst_119 = arith.constant dense<0.000000e+00> : vector<8x128xf32>
    %446 = tpu.matmul %444, %445, %cst_119 {dimension_numbers = #tpu.dot_dimension_numbers<[1], [0], [0], [1], [0, 0, 1, 1], [], []>} : vector<8x64xf32>, vector<64x128xf32>, vector<8x128xf32> -> vector<8x128xf32>
    %447 = arith.addf %438, %446 : vector<8x128xf32>
    %c0_120 = arith.constant 0 : index
    %c352_121 = arith.constant 352 : index
    %448 = vector.load %arg11[%c0_120, %c352_121] : memref<8x576xf32, #tpu.memory_space<vmem>>, vector<8x96xf32>
    %cst_122 = arith.constant dense<0.000000e+00> : vector<8x64xf32>
    %449 = tpu.matmul %448, %346, %cst_122 {dimension_numbers = #tpu.dot_dimension_numbers<[1], [0], [0], [1], [0, 0, 1, 1], [], []>} : vector<8x96xf32>, vector<96x64xf32>, vector<8x64xf32> -> vector<8x64xf32>
    %450 = vector.broadcast %347 : vector<1x64xf32> to vector<8x64xf32>
    %451 = arith.addf %449, %450 : vector<8x64xf32>
    %cst_123 = arith.constant 0.000000e+00 : f32
    %452 = vector.broadcast %cst_123 : f32 to vector<8x64xf32>
    %453 = arith.maximumf %451, %452 : vector<8x64xf32>
    %c704 = arith.constant 704 : index
    %c0_124 = arith.constant 0 : index
    %454 = vector.load %arg6[%c704, %c0_124] : memref<1024x128xf32, #tpu.memory_space<vmem>>, vector<64x128xf32>
    %cst_125 = arith.constant dense<0.000000e+00> : vector<8x128xf32>
    %455 = tpu.matmul %453, %454, %cst_125 {dimension_numbers = #tpu.dot_dimension_numbers<[1], [0], [0], [1], [0, 0, 1, 1], [], []>} : vector<8x64xf32>, vector<64x128xf32>, vector<8x128xf32> -> vector<8x128xf32>
    %456 = arith.addf %447, %455 : vector<8x128xf32>
    %c0_126 = arith.constant 0 : index
    %c384_127 = arith.constant 384 : index
    %457 = vector.load %arg11[%c0_126, %c384_127] : memref<8x576xf32, #tpu.memory_space<vmem>>, vector<8x96xf32>
    %cst_128 = arith.constant dense<0.000000e+00> : vector<8x64xf32>
    %458 = tpu.matmul %457, %346, %cst_128 {dimension_numbers = #tpu.dot_dimension_numbers<[1], [0], [0], [1], [0, 0, 1, 1], [], []>} : vector<8x96xf32>, vector<96x64xf32>, vector<8x64xf32> -> vector<8x64xf32>
    %459 = vector.broadcast %347 : vector<1x64xf32> to vector<8x64xf32>
    %460 = arith.addf %458, %459 : vector<8x64xf32>
    %cst_129 = arith.constant 0.000000e+00 : f32
    %461 = vector.broadcast %cst_129 : f32 to vector<8x64xf32>
    %462 = arith.maximumf %460, %461 : vector<8x64xf32>
    %c768 = arith.constant 768 : index
    %c0_130 = arith.constant 0 : index
    %463 = vector.load %arg6[%c768, %c0_130] : memref<1024x128xf32, #tpu.memory_space<vmem>>, vector<64x128xf32>
    %cst_131 = arith.constant dense<0.000000e+00> : vector<8x128xf32>
    %464 = tpu.matmul %462, %463, %cst_131 {dimension_numbers = #tpu.dot_dimension_numbers<[1], [0], [0], [1], [0, 0, 1, 1], [], []>} : vector<8x64xf32>, vector<64x128xf32>, vector<8x128xf32> -> vector<8x128xf32>
    %465 = arith.addf %456, %464 : vector<8x128xf32>
    %c0_132 = arith.constant 0 : index
    %c416_133 = arith.constant 416 : index
    %466 = vector.load %arg11[%c0_132, %c416_133] : memref<8x576xf32, #tpu.memory_space<vmem>>, vector<8x96xf32>
    %cst_134 = arith.constant dense<0.000000e+00> : vector<8x64xf32>
    %467 = tpu.matmul %466, %346, %cst_134 {dimension_numbers = #tpu.dot_dimension_numbers<[1], [0], [0], [1], [0, 0, 1, 1], [], []>} : vector<8x96xf32>, vector<96x64xf32>, vector<8x64xf32> -> vector<8x64xf32>
    %468 = vector.broadcast %347 : vector<1x64xf32> to vector<8x64xf32>
    %469 = arith.addf %467, %468 : vector<8x64xf32>
    %cst_135 = arith.constant 0.000000e+00 : f32
    %470 = vector.broadcast %cst_135 : f32 to vector<8x64xf32>
    %471 = arith.maximumf %469, %470 : vector<8x64xf32>
    %c832 = arith.constant 832 : index
    %c0_136 = arith.constant 0 : index
    %472 = vector.load %arg6[%c832, %c0_136] : memref<1024x128xf32, #tpu.memory_space<vmem>>, vector<64x128xf32>
    %cst_137 = arith.constant dense<0.000000e+00> : vector<8x128xf32>
    %473 = tpu.matmul %471, %472, %cst_137 {dimension_numbers = #tpu.dot_dimension_numbers<[1], [0], [0], [1], [0, 0, 1, 1], [], []>} : vector<8x64xf32>, vector<64x128xf32>, vector<8x128xf32> -> vector<8x128xf32>
    %474 = arith.addf %465, %473 : vector<8x128xf32>
    %c0_138 = arith.constant 0 : index
    %c448_139 = arith.constant 448 : index
    %475 = vector.load %arg11[%c0_138, %c448_139] : memref<8x576xf32, #tpu.memory_space<vmem>>, vector<8x96xf32>
    %cst_140 = arith.constant dense<0.000000e+00> : vector<8x64xf32>
    %476 = tpu.matmul %475, %346, %cst_140 {dimension_numbers = #tpu.dot_dimension_numbers<[1], [0], [0], [1], [0, 0, 1, 1], [], []>} : vector<8x96xf32>, vector<96x64xf32>, vector<8x64xf32> -> vector<8x64xf32>
    %477 = vector.broadcast %347 : vector<1x64xf32> to vector<8x64xf32>
    %478 = arith.addf %476, %477 : vector<8x64xf32>
    %cst_141 = arith.constant 0.000000e+00 : f32
    %479 = vector.broadcast %cst_141 : f32 to vector<8x64xf32>
    %480 = arith.maximumf %478, %479 : vector<8x64xf32>
    %c896 = arith.constant 896 : index
    %c0_142 = arith.constant 0 : index
    %481 = vector.load %arg6[%c896, %c0_142] : memref<1024x128xf32, #tpu.memory_space<vmem>>, vector<64x128xf32>
    %cst_143 = arith.constant dense<0.000000e+00> : vector<8x128xf32>
    %482 = tpu.matmul %480, %481, %cst_143 {dimension_numbers = #tpu.dot_dimension_numbers<[1], [0], [0], [1], [0, 0, 1, 1], [], []>} : vector<8x64xf32>, vector<64x128xf32>, vector<8x128xf32> -> vector<8x128xf32>
    %483 = arith.addf %474, %482 : vector<8x128xf32>
    %c0_144 = arith.constant 0 : index
    %c480_145 = arith.constant 480 : index
    %484 = vector.load %arg11[%c0_144, %c480_145] : memref<8x576xf32, #tpu.memory_space<vmem>>, vector<8x96xf32>
    %cst_146 = arith.constant dense<0.000000e+00> : vector<8x64xf32>
    %485 = tpu.matmul %484, %346, %cst_146 {dimension_numbers = #tpu.dot_dimension_numbers<[1], [0], [0], [1], [0, 0, 1, 1], [], []>} : vector<8x96xf32>, vector<96x64xf32>, vector<8x64xf32> -> vector<8x64xf32>
    %486 = vector.broadcast %347 : vector<1x64xf32> to vector<8x64xf32>
    %487 = arith.addf %485, %486 : vector<8x64xf32>
    %cst_147 = arith.constant 0.000000e+00 : f32
    %488 = vector.broadcast %cst_147 : f32 to vector<8x64xf32>
    %489 = arith.maximumf %487, %488 : vector<8x64xf32>
    %c960 = arith.constant 960 : index
    %c0_148 = arith.constant 0 : index
    %490 = vector.load %arg6[%c960, %c0_148] : memref<1024x128xf32, #tpu.memory_space<vmem>>, vector<64x128xf32>
    %cst_149 = arith.constant dense<0.000000e+00> : vector<8x128xf32>
    %491 = tpu.matmul %489, %490, %cst_149 {dimension_numbers = #tpu.dot_dimension_numbers<[1], [0], [0], [1], [0, 0, 1, 1], [], []>} : vector<8x64xf32>, vector<64x128xf32>, vector<8x128xf32> -> vector<8x128xf32>
    %492 = arith.addf %483, %491 : vector<8x128xf32>
    %c0_150 = arith.constant 0 : index
    %c0_151 = arith.constant 0 : index
    %493 = vector.load %arg7[%c0_150, %c0_151] : memref<1x128xf32, #tpu.memory_space<vmem>>, vector<1x128xf32>
    %494 = vector.broadcast %493 : vector<1x128xf32> to vector<8x128xf32>
    %495 = arith.addf %492, %494 : vector<8x128xf32>
    %cst_152 = arith.constant 0.000000e+00 : f32
    %496 = vector.broadcast %cst_152 : f32 to vector<8x128xf32>
    %497 = arith.maximumf %495, %496 : vector<8x128xf32>
    %c0_153 = arith.constant 0 : index
    %c0_154 = arith.constant 0 : index
    %498 = vector.load %arg8[%c0_153, %c0_154] : memref<1x128xf32, #tpu.memory_space<vmem>>, vector<1x128xf32>
    %cst_155 = arith.constant dense<0.000000e+00> : vector<1x8xf32>
    %499 = tpu.matmul %498, %497, %cst_155 {dimension_numbers = #tpu.dot_dimension_numbers<[1], [1], [0], [0], [0, 0, 1, 0], [], []>} : vector<1x128xf32>, vector<8x128xf32>, vector<1x8xf32> -> vector<1x8xf32>
    %c0_156 = arith.constant 0 : index
    %c0_157 = arith.constant 0 : index
    %500 = vector.load %arg9[%c0_156, %c0_157] : memref<1x1xf32, #tpu.memory_space<vmem>>, vector<1x1xf32>
    %501 = vector.broadcast %500 : vector<1x1xf32> to vector<1x8xf32>
    %502 = arith.addf %499, %501 : vector<1x8xf32>
    %503 = math.absf %502 : vector<1x8xf32>
    %cst_158 = arith.constant 0.000000e+00 : f32
    %504 = vector.broadcast %cst_158 : f32 to vector<1x8xf32>
    %505 = arith.subf %504, %503 : vector<1x8xf32>
    %506 = math.exp %505 : vector<1x8xf32>
    %cst_159 = arith.constant 0.000000e+00 : f32
    %507 = vector.broadcast %cst_159 : f32 to vector<1x8xf32>
    %508 = arith.cmpf oge, %502, %507 : vector<1x8xf32>
    %cst_160 = arith.constant 1.000000e+00 : f32
    %509 = vector.broadcast %cst_160 : f32 to vector<1x8xf32>
    %510 = arith.addf %509, %506 : vector<1x8xf32>
    %cst_161 = arith.constant 1.000000e+00 : f32
    %511 = vector.broadcast %cst_161 : f32 to vector<1x8xf32>
    %512 = arith.divf %511, %510 : vector<1x8xf32>
    %cst_162 = arith.constant 1.000000e+00 : f32
    %513 = vector.broadcast %cst_162 : f32 to vector<1x8xf32>
    %514 = arith.addf %513, %506 : vector<1x8xf32>
    %515 = arith.divf %506, %514 : vector<1x8xf32>
    %516 = arith.select %508, %512, %515 : vector<1x8xi1>, vector<1x8xf32>
    %517 = vector.shape_cast %516 : vector<1x8xf32> to vector<1x1x8xf32>
    %c0_163 = arith.constant 0 : index
    %c0_164 = arith.constant 0 : index
    %c0_165 = arith.constant 0 : index
    %518 = vector.load %arg10[%c0_163, %c0_164, %c0_165] : memref<1x1x8xf32, #tpu.memory_space<vmem>>, vector<1x1x8xf32>
    tpu.vector_store %arg10[%c0_163, %c0_164, %c0_165], %517 {strides = array<i32>} : memref<1x1x8xf32, #tpu.memory_space<vmem>>, vector<1x1x8xf32>,
    return
  }
  func.func @transform_0(%arg0: i32) -> (i32, i32) {
    %c0_i32 = arith.constant 0 : i32
    %c0_i32_0 = arith.constant 0 : i32
    return %arg0, %c0_i32 : i32, i32
  }
  func.func @transform_1(%arg0: i32) -> (i32, i32) {
    %c0_i32 = arith.constant 0 : i32
    %c0_i32_0 = arith.constant 0 : i32
    %c0_i32_1 = arith.constant 0 : i32
    return %c0_i32, %c0_i32_0 : i32, i32
  }
  func.func @transform_2(%arg0: i32) -> (i32, i32) {
    %c0_i32 = arith.constant 0 : i32
    %c0_i32_0 = arith.constant 0 : i32
    %c0_i32_1 = arith.constant 0 : i32
    return %c0_i32, %c0_i32_0 : i32, i32
  }
  func.func @transform_3(%arg0: i32) -> (i32, i32) {
    %c0_i32 = arith.constant 0 : i32
    %c0_i32_0 = arith.constant 0 : i32
    %c0_i32_1 = arith.constant 0 : i32
    return %c0_i32, %c0_i32_0 : i32, i32
  }
  func.func @transform_4(%arg0: i32) -> (i32, i32) {
    %c0_i32 = arith.constant 0 : i32
    %c0_i32_0 = arith.constant 0 : i32
    %c0_i32_1 = arith.constant 0 : i32
    return %c0_i32, %c0_i32_0 : i32, i32
  }
  func.func @transform_5(%arg0: i32) -> (i32, i32) {
    %c0_i32 = arith.constant 0 : i32
    %c0_i32_0 = arith.constant 0 : i32
    %c0_i32_1 = arith.constant 0 : i32
    return %c0_i32, %c0_i32_0 : i32, i32
  }
  func.func @transform_6(%arg0: i32) -> (i32, i32) {
    %c0_i32 = arith.constant 0 : i32
    %c0_i32_0 = arith.constant 0 : i32
    %c0_i32_1 = arith.constant 0 : i32
    return %c0_i32, %c0_i32_0 : i32, i32
  }
  func.func @transform_7(%arg0: i32) -> (i32, i32) {
    %c0_i32 = arith.constant 0 : i32
    %c0_i32_0 = arith.constant 0 : i32
    %c0_i32_1 = arith.constant 0 : i32
    return %c0_i32, %c0_i32_0 : i32, i32
  }
  func.func @transform_8(%arg0: i32) -> (i32, i32) {
    %c0_i32 = arith.constant 0 : i32
    %c0_i32_0 = arith.constant 0 : i32
    %c0_i32_1 = arith.constant 0 : i32
    return %c0_i32, %c0_i32_0 : i32, i32
  }
  func.func @transform_9(%arg0: i32) -> (i32, i32, i32) {
    %c0_i32 = arith.constant 0 : i32
    %c0_i32_0 = arith.constant 0 : i32
    %c0_i32_1 = arith.constant 0 : i32
    return %arg0, %c0_i32, %c0_i32_0 : i32, i32, i32
  }
}

</mosaic_0001>

<bundles_post_ra>
// kernel: tpu_custom_call.1
= control target key start
LH: loop header
LB: loop body
LE: loop exit
PB: predicated region body
PF: predicated region fallthrough
CT: control target
= control target key end

     0   :  { %s5491_s0 = inlined_call_operand.vmem [shape: f32[8,16], index: 0, kind: input, shape index: {}]   ;;  %s5492_s1 = inlined_call_operand.vmem [shape: f32[3,32], index: 1, kind: input, shape index: {}]   ;;  %s5493_s2 = inlined_call_operand.vmem [shape: f32[1,32], index: 2, kind: input, shape index: {}]   ;;  %s5494_s3 = inlined_call_operand.vmem [shape: f32[96,64], index: 3, kind: input, shape index: {}]   ;;  %s5495_s4 = inlined_call_operand.vmem [shape: f32[1,64], index: 4, kind: input, shape index: {}]   ;;  %s5496_s5 = inlined_call_operand.hbm [shape: f32[1024,128], index: 5, kind: input, shape index: {}]   ;;  %s5497_s6 = inlined_call_operand.vmem [shape: f32[1,128], index: 6, kind: input, shape index: {}]   ;;  %s5498_s7 = inlined_call_operand.vmem [shape: f32[1,128], index: 7, kind: input, shape index: {}]   ;;  %s5499_s8 = inlined_call_operand.<no memory space> [shape: f32[1,1], index: 8, kind: input, shape index: {}]   ;;  %s5500_s9 = inlined_call_operand.hbm [shape: f32[1,1,8], index: 9, kind: output, shape index: {}]  }
   0x1   :  { %v14_v0 = vstv %s5499_s8 }
   0x2   :  { %15 = vst [vmem:[#allocation3] sm:$0x1] %v14_v0 }
   0x3   :  { %16 = vsyncpa [#allocation5], 0 }
   0x4   :  { %17 = vsyncpa [#allocation6], 0  ;;  %s4701_s11 = smov [#allocation4]   ;;  %s4653_s15 = scalar_lea.hbm %s5496_s5, 16384 }
   0x5   :  { %s33_s12 = sshll.u32 %s4701_s11, 4  ;;  %p4654_p0 = scmp.ne.s32.totalorder %s5496_s5, %s4653_s15  ;;  %s34_s12 = int_to_ptr.vmem [resolvable:$true] %s33_s12 }
   0x6   :  { %p4657_p1 = scmp.lt.u32.totalorder %s4653_s15, %s5496_s5 }
   0x8   :  { %p4659_p2 = pnand %p4657_p1, %p4654_p0 }
   0xa   :  { %4662 = shalt.err (!%p4659_p2)
}
   0xb   :  { %s4663_s8 = scalar_lea.vmem %s34_s12, 16384  ;;  %p4668_p4 = scmp.lt.s32.totalorder %s34_s12, %s34_s12 }
   0xc   :  { %p4664_p3 = scmp.ne.s32.totalorder %s34_s12, %s4663_s8  ;;  %p4669_p5 = scmp.lt.s32.totalorder %s4663_s8, %s4663_s8 }
   0xe   :  { %p4670_p6 = por %p4669_p5, %p4668_p4 }
  0x10   :  { %p4671_p7 = pnand %p4670_p6, %p4664_p3 }
  0x12   :  { %4674 = shalt.err (!%p4671_p7)
}
  0x13   :  { %s4702_s20 = smov 128   ;;  %s4703_s21 = smov 8  }
  0x14   :  { %39 = dma.hbm_to_vmem [thread:$0]  %s5496_s5, 16384, %s34_s12, [#allocation5], %s4702_s20, %s4702_s20, %s4703_s21  }
  0x15   :  { %4697 = dma.done.wait [#allocation5], 16384  }
  0x16   :  { %4698 = vsyncadd [#allocation5], 4294950912  ;;  %v4704_v1 = vmov 2   ;;  %v4705_v2 = vmov 1   ;;  %v4795_v3 = vld [vmem:[%s5491_s0] sm:$0xff]  ;;  %v4706_v4 = vmov 3   ;;  %v61_v17 = vlaneseq }
  0x17   :  { %4633 = vset.pattern.permute.xlu1 %v4704_v1  ;;  %4631 = vset.pattern.permute.xlu0 %v4705_v2  ;;  %v4707_v5 = vmov 0   ;;  %v4708_v6 = vmov 4   ;;  %v313_v7 = vld [vmem:[%s5494_s3] sm:$0xff]  ;;  %v314_v8 = vld [vmem:[%s5494_s3 + $0x8] sm:$0xff]  ;;  %v315_v9 = vld [vmem:[%s5494_s3 + $0x10] sm:$0xff]  ;;  %v4709_v10 = vmov 0.0|0.0  }
  0x18   :  { %98 = vperm.xlu1 %4633, %v4795_v3   ;;  %74 = vperm.xlu0 %4631, %v4795_v3   ;;  %v4812_v11 = vpack.c.bf16 %v314_v8, %v313_v7  ;;  %v316_v12 = vld [vmem:[%s5494_s3 + $0x18] sm:$0xff]  ;;  %v317_v14 = vld [vmem:[%s5494_s3 + $0x20] sm:$0xff]  ;;  %v318_v15 = vld [vmem:[%s5494_s3 + $0x28] sm:$0xff]  ;;  %v4840_v18 = vshrl.u32 %v61_v17, 7  ;;  %vm52_vm0 = vcmask 261120   ;;  %v4710_v31 = vmov 0.0  }
  0x19   :  { %4125 = vmatprep.subr.bf16.mxu0 %v4709_v10  ;;  %4143 = vmatprep.subr.bf16.mxu1 %v4709_v10  ;;  %v4819_v13 = vpack.c.bf16 %v316_v12, %v315_v9  ;;  %v4831_v16 = vpack.c.bf16 %v318_v15, %v317_v14  ;;  %v50_v20 = vld [vmem:[%s5492_s1] sm:$0x7]  ;;  %v319_v27 = vld [vmem:[%s5494_s3 + $0x30] sm:$0xff]  ;;  %v320_v28 = vld [vmem:[%s5494_s3 + $0x38] sm:$0xff]  ;;  %53 = vst.msk [vmem:[#allocation2] sm:$0xff] %vm52_vm0, %v4710_v31  ;;  %vm54_vm1 = vcmask 523520  }
  0x1a   :  { %4127 = vmatpush3.bf16.msra.mxu0 %v4812_v11  ;;  %4145 = vmatpush3.bf16.msra.mxu1 %v4812_v11  ;;  %v63_v19 = vsub.s32 1, %v4840_v18  ;;  %v93_v22 = vsub.s32 0, %v4840_v18  ;;  %v79_v23 = vsub.s32 2, %v4840_v18  ;;  %v4853_v24 = vld [vmem:[%s5493_s2] ss:$0 sm:$0xff]  ;;  %v4871_v32 = vpack.c.bf16 %v320_v28, %v319_v27  ;;  %55 = vst.msk [vmem:[#allocation2 + $0x20] sm:$0xff] %vm54_vm1, %v4710_v31 }
  0x1b   :  { %4128 = vmatprep.subr.bf16.mxu0 %v4709_v10  ;;  %4146 = vmatprep.subr.bf16.mxu1 %v4709_v10  ;;  %v321_v36 = vld [vmem:[%s5494_s3 + $0x40] sm:$0xff]  ;;  %v322_v37 = vld [vmem:[%s5494_s3 + $0x48] sm:$0xff]  ;;  %v323_v42 = vld [vmem:[%s5494_s3 + $0x50] sm:$0xff]  ;;  %vm4711_vm2 = vmmov 0   ;;  %v4713_v59 = vmov 5   ;;  %s4714_s0 = smov 64  }
  0x1c   :  { %4634 = vset.pattern.permute.xlu1 %v4706_v4  ;;  %4632 = vset.pattern.permute.xlu0 %v4707_v5  ;;  %v4846_v21 = vrot.slane %v50_v20, %v63_v19  ;;  %v4865_v29 = vrot.slane %v50_v20, %v93_v22  ;;  %v4873_v33 = vrot.slane %v50_v20, %v79_v23  ;;  %v324_v43 = vld [vmem:[%s5494_s3 + $0x58] sm:$0xff]  ;;  %s4712_s3 = smov 32   ;;  %s4715_s27 = smov 96   ;;  %v4716_v61 = vmov 6   ;;  %v408_v17 = vld [vmem:[#allocation4] sm:$0xff] }
  0x1d   :  { %115 = vperm.xlu1 %4634, %v4795_v3   ;;  %58 = vperm.xlu0 %4632, %v4795_v3   ;;  %v4891_v41 = vpack.c.bf16 %v322_v37, %v321_v36  ;;  %v4914_v52 = vpack.c.bf16 %v324_v43, %v323_v42  ;;  %v4717_v62 = vmov 7   ;;  %vm108_vm3 = vcmask 785920   ;;  %v409_v19 = vld [vmem:[#allocation4 + $0x8] sm:$0xff]  ;;  %v410_v23 = vld [vmem:[#allocation4 + $0x10] sm:$0xff]  ;;  %v412_v28 = vld [vmem:[#allocation4 + $0x20] sm:$0xff] }
  0x1e   :  { %4130 = vmatpush3.bf16.msra.mxu0 %v4819_v13  ;;  %4148 = vmatpush3.bf16.msra.mxu1 %v4819_v13  ;;  %vm125_vm4 = vcmask 1048320   ;;  %vm333_vm5 = vcmask 785408   ;;  %v4174_v20 = vpack.c.bf16 %v409_v19, %v408_v17  ;;  %v415_v36 = vld [vmem:[#allocation4 + $0x38] sm:$0xff]  ;;  %v497_v19 = vld [vmem:[#allocation4 + $0x70] sm:$0xff]  ;;  %vm499_vm6 = vcmask 523264  }
  0x1f   :  { %4131 = vmatprep.subr.bf16.mxu0 %v4709_v10  ;;  %4149 = vmatprep.subr.bf16.mxu1 %v4709_v10  ;;  %vm2978_vm7 = vcmask 57344  }
  0x20   :  { %3408 = vmatprep.mubr.msk.f32.mxu0 %vm4711_vm2, %v4710_v31  ;;  %3435 = vmatprep.mubr.msk.f32.mxu1 %vm4711_vm2, %v4710_v31 }
  0x21   :  { %4635 = vset.pattern.permute.xlu1 %v4708_v6  ;;  %4636 = vset.pattern.permute.xlu0 %v4713_v59 }
  0x22   :  { %4133 = vmatpush3.bf16.msra.mxu0 %v4831_v16  ;;  %4151 = vmatpush3.bf16.msra.mxu1 %v4831_v16 }
  0x23   :  { %4134 = vmatprep.subr.bf16.mxu0 %v4709_v10  ;;  %4152 = vmatprep.subr.bf16.mxu1 %v4709_v10 }
  0x26   :  { %4136 = vmatpush3.bf16.msra.mxu0 %v4871_v32  ;;  %4154 = vmatpush3.bf16.msra.mxu1 %v4871_v32 }
  0x27   :  { %4137 = vmatprep.subr.bf16.mxu0 %v4709_v10  ;;  %4155 = vmatprep.subr.bf16.mxu1 %v4709_v10 }
  0x2a   :  { %4139 = vmatpush3.bf16.msra.mxu0 %v4891_v41  ;;  %4157 = vmatpush3.bf16.msra.mxu1 %v4891_v41 }
  0x2b   :  { %4140 = vmatprep.subr.bf16.mxu0 %v4709_v10  ;;  %4158 = vmatprep.subr.bf16.mxu1 %v4709_v10 }
  0x2e   :  { %4142 = vmatpush3.bf16.msra.mxu0 %v4914_v52  ;;  %4160 = vmatpush3.bf16.msra.mxu1 %v4914_v52 }
  0x2f   :  { %4173 = vmatprep.subr.bf16.mxu1 %v4709_v10  ;;  %4161 = vmatprep.subr.bf16.mxu0 %v4709_v10 }
  0x97   :  { %v4855_v25 = vpop.permute.xlu1 %98  ;;  %v75_v26 = vpop.permute.xlu0 %74 }
  0x98   :  { %v110_v30 = vmul.f32 %v4855_v25, %v4846_v21  ;;  %v89_v35 = vmul.f32 %v75_v26, %v4846_v21  ;;  %v112_v38 = vmul.f32 %v4865_v29, %v75_v26  ;;  %v101_v44 = vmul.f32 %v4855_v25, %v4873_v33 }
  0x99   :  { %v81_v46 = vmul.f32 %v4873_v33, %v75_v26  ;;  %v129_v6 = vmul.f32 %v4855_v25, %v4865_v29  ;;  %v411_v26 = vld [vmem:[#allocation4 + $0x18] sm:$0xff] }
  0x9a   :  { %v111_v34 = vadd.f32 %v4853_v24, %v110_v30  ;;  %v90_v47 = vadd.f32 %v4853_v24, %v89_v35  ;;  %v4177_v25 = vpack.c.bf16 %v411_v26, %v410_v23  ;;  %v413_v30 = vld [vmem:[#allocation4 + $0x28] sm:$0xff]  ;;  %v414_v35 = vld [vmem:[#allocation4 + $0x30] sm:$0xff] }
  0x9b   :  { %v4989_v23 = vld [vmem:[%s5495_s4] ss:$0 sm:$0xff] }
  0x9c   :  { %v4888_v39 = vpop.permute.xlu1 %115  ;;  %v59_v40 = vpop.permute.xlu0 %58  ;;  %v113_v48 = vadd.f32 %v112_v38, %v111_v34  ;;  %v4180_v34 = vpack.c.bf16 %v413_v30, %v412_v28  ;;  %v4183_v38 = vpack.c.bf16 %v415_v36, %v414_v35 }
  0x9d   :  { %v65_v45 = vmul.f32 %v4846_v21, %v59_v40  ;;  %v95_v49 = vmul.f32 %v4865_v29, %v59_v40  ;;  %v118_v50 = vmul.f32 %v4888_v39, %v4873_v33  ;;  %v127_v4 = vmul.f32 %v4888_v39, %v4846_v21 }
  0x9f   :  { %v72_v51 = vadd.f32 %v4853_v24, %v65_v45  ;;  %v96_v53 = vadd.f32 %v95_v49, %v90_v47  ;;  %v119_v57 = vadd.f32 %v118_v50, %v113_v48  ;;  %v128_v7 = vadd.f32 %v4853_v24, %v127_v4  ;;  %v491_v4 = vld [vmem:[#allocation4 + $0x40] sm:$0xff] }
  0xa1   :  { %v82_v54 = vadd.f32 %v81_v46, %v72_v51  ;;  %v102_v55 = vadd.f32 %v101_v44, %v96_v53  ;;  %v120_v60 = vmax.f32 %v119_v57, 0.0  ;;  %v130_v9 = vadd.f32 %v129_v6, %v128_v7  ;;  %v492_v6 = vld [vmem:[#allocation4 + $0x48] sm:$0xff]  ;;  %v493_v7 = vld [vmem:[#allocation4 + $0x50] sm:$0xff] }
  0xa2   :  { %v141_v44 = vmul.f32 %v4888_v39, %v4865_v29 }
  0xa3   :  { %v83_v56 = vmax.f32 %v82_v54, 0.0  ;;  %v103_v58 = vmax.f32 %v102_v55, 0.0 }
  0xa5   :  { %85 = vrot.lane.b32.xlu1 %v83_v56, %s4712_s3  ;;  %105 = vrot.lane.b32.xlu0 %v103_v58, %s4714_s0 }
  0xa9   :  { %122 = vrot.lane.b32.xlu1 %v120_v60, %s4715_s27 }
  0xad   :  { %132 = vperm.xlu1 %4635, %v4795_v3  }
  0xb1   :  { %4637 = vset.pattern.permute.xlu1 %v4716_v61 }
  0xb2   :  { %160 = vperm.xlu1 %4637, %v4795_v3  }
  0xb6   :  { %4638 = vset.pattern.permute.xlu1 %v4717_v62 }
  0xb7   :  { %176 = vperm.xlu1 %4638, %v4795_v3  }
 0x117   :  { %v86_v63 = vpop.permute.xlu1 %85  ;;  %v106_v0 = vpop.permute.xlu0 %105 }
 0x118   :  { %88 = vst.msk [vmem:[#allocation2] sm:$0xff] %vm54_vm1, %v86_v63 }
 0x119   :  { %109 = vst.msk [vmem:[#allocation2] sm:$0xff] %vm108_vm3, %v106_v0  ;;  %v4718_v0 = vmov 9  }
 0x11a   :  { %4640 = vset.pattern.permute.xlu1 %v4718_v0 }
 0x11b   :  { %v123_v1 = vpop.permute.xlu1 %122 }
 0x11c   :  { %126 = vst.msk [vmem:[#allocation2] sm:$0xff] %vm125_vm4, %v123_v1  ;;  %v4719_v1 = vmov 8  }
 0x123   :  { %v4932_v2 = vld [vmem:[#allocation2] sm:$0xff] }
 0x124   :  { %416 = vrot.lane.b32.xlu0 %v4932_v2, %s4715_s27  ;;  %3409 = vmatmul.mubr.msk.f32.vlgmr.msra.gmra.mrb[0].mxu0 %vm333_vm5, %v4932_v2 }
 0x125   :  { %3454 = vmatprep.mubr.msk.f32.mxu0 %vm4711_vm2, %v4710_v31 }
 0x128   :  { %144 = vperm.xlu0 %4636, %v4795_v3  }
 0x12c   :  { %v133_v8 = vpop.permute.xlu1 %132  ;;  %4639 = vset.pattern.permute.xlu0 %v4719_v1 }
 0x12d   :  { %v135_v12 = vmul.f32 %v133_v8, %v4873_v33  ;;  %v139_v37 = vmul.f32 %v133_v8, %v4846_v21  ;;  %v157_v54 = vmul.f32 %v133_v8, %v4865_v29  ;;  %v4162_v8 = vpack.c.bf16 %v492_v6, %v491_v4 }
 0x12f   :  { %v136_v14 = vadd.f32 %v135_v12, %v130_v9  ;;  %v140_v43 = vadd.f32 %v4853_v24, %v139_v37  ;;  %v494_v9 = vld [vmem:[#allocation4 + $0x58] sm:$0xff]  ;;  %4163 = vmatpush3.bf16.msra.mxu0 %v4162_v8  ;;  %v4720_v37 = vmov 10  }
 0x130   :  { %v4165_v12 = vpack.c.bf16 %v494_v9, %v493_v7  ;;  %4164 = vmatprep.subr.bf16.mxu0 %v4709_v10 }
 0x131   :  { %v137_v15 = vmax.f32 %v136_v14, 0.0  ;;  %v4954_v40 = vpop.permute.xlu1 %160  ;;  %v142_v48 = vadd.f32 %v141_v44, %v140_v43  ;;  %v495_v14 = vld [vmem:[#allocation4 + $0x60] sm:$0xff] }
 0x132   :  { %v171_v42 = vmul.f32 %v4954_v40, %v4846_v21  ;;  %v163_v57 = vmul.f32 %v4954_v40, %v4873_v33 }
 0x133   :  { %138 = vst.msk [vmem:[#allocation2 + $0x8] sm:$0xff] %vm52_vm0, %v137_v15  ;;  %v496_v15 = vld [vmem:[#allocation4 + $0x68] sm:$0xff]  ;;  %4166 = vmatpush3.bf16.msra.mxu0 %v4165_v12 }
 0x134   :  { %v172_v45 = vadd.f32 %v4853_v24, %v171_v42  ;;  %v4168_v17 = vpack.c.bf16 %v496_v15, %v495_v14  ;;  %4167 = vmatprep.subr.bf16.mxu0 %v4709_v10 }
 0x136   :  { %v4964_v46 = vpop.permute.xlu1 %176 }
 0x137   :  { %v179_v49 = vmul.f32 %v4964_v46, %v4873_v33  ;;  %4169 = vmatpush3.bf16.msra.mxu0 %v4168_v17  ;;  %v201_v4 = vmul.f32 %v4964_v46, %v4865_v29 }
 0x138   :  { %4170 = vmatprep.subr.bf16.mxu0 %v4709_v10 }
 0x196   :  { %v417_v27 = vpop.permute.xlu0 %416 }
 0x197   :  { %3436 = vmatmul.mubr.msk.f32.vlgmr.msra.gmra.mrb[0].mxu1 %vm333_vm5, %v417_v27 }
 0x198   :  { %4175 = vmatpush3.bf16.msra.mxu1 %v4174_v20  ;;  %3473 = vmatprep.mubr.msk.f32.mxu1 %vm4711_vm2, %v4710_v31 }
 0x199   :  { %4176 = vmatprep.subr.bf16.mxu1 %v4709_v10 }
 0x19c   :  { %4178 = vmatpush3.bf16.msra.mxu1 %v4177_v25 }
 0x19d   :  { %4179 = vmatprep.subr.bf16.mxu1 %v4709_v10 }
 0x1a0   :  { %4181 = vmatpush3.bf16.msra.mxu1 %v4180_v34 }
 0x1a1   :  { %4182 = vmatprep.subr.bf16.mxu1 %v4709_v10 }
 0x1a4   :  { %4184 = vmatpush3.bf16.msra.mxu1 %v4183_v38  ;;  %v4721_v38 = vmov 11  }
 0x1a5   :  { %4203 = vmatprep.subr.bf16.mxu1 %v4709_v10 }
 0x1a7   :  { %v145_v47 = vpop.permute.xlu0 %144 }
 0x1a8   :  { %v147_v50 = vmul.f32 %v145_v47, %v4873_v33  ;;  %v155_v51 = vmul.f32 %v145_v47, %v4846_v21  ;;  %v173_v53 = vmul.f32 %v145_v47, %v4865_v29 }
 0x1aa   :  { %v156_v39 = vadd.f32 %v4853_v24, %v155_v51  ;;  %v174_v55 = vadd.f32 %v173_v53, %v172_v45  ;;  %v148_v56 = vadd.f32 %v147_v50, %v142_v48 }
 0x1ac   :  { %v149_v58 = vmax.f32 %v148_v56, 0.0  ;;  %v158_v59 = vadd.f32 %v157_v54, %v156_v39  ;;  %v180_v60 = vadd.f32 %v179_v49, %v174_v55  ;;  %v187_v39 = vmul.f32 %v4964_v46, %v4846_v21 }
 0x1ad   :  { %v189_v56 = vmul.f32 %v4954_v40, %v4865_v29 }
 0x1ae   :  { %151 = vrot.lane.b32.xlu0 %v149_v58, %s4712_s3  ;;  %v164_v61 = vadd.f32 %v163_v57, %v158_v59  ;;  %v181_v63 = vmax.f32 %v180_v60, 0.0  ;;  %v188_v57 = vadd.f32 %v4853_v24, %v187_v39  ;;  %v735_v39 = vld [vmem:[#allocation4 + $0xb8] sm:$0xff] }
 0x1b0   :  { %v165_v62 = vmax.f32 %v164_v61, 0.0  ;;  %v190_v61 = vadd.f32 %v189_v56, %v188_v57 }
 0x1b2   :  { %167 = vrot.lane.b32.xlu1 %v165_v62, %s4714_s0  ;;  %183 = vrot.lane.b32.xlu0 %v181_v63, %s4715_s27 }
 0x1b6   :  { %650 = vrot.lane.b32.xlu1 %v4932_v2, %s4714_s0 }
 0x1ba   :  { %810 = vrot.lane.b32.xlu1 %v4932_v2, %s4712_s3  ;;  %v498_v2 = vld [vmem:[#allocation4 + $0x78] sm:$0xff] }
 0x1bb   :  { %v4171_v20 = vpack.c.bf16 %v498_v2, %v497_v19 }
 0x1bd   :  { %4172 = vmatpush3.bf16.msra.mxu0 %v4171_v20 }
 0x1be   :  { %4185 = vmatprep.subr.bf16.mxu0 %v4709_v10 }
 0x1f7   :  { %v403_v26 = vpop.f32.mrb[0].mxu0 }
 0x1f8   :  { %v404_v27 = vadd.f32 %v4989_v23, %v403_v26  ;;  %v3410_v25 = vpop.f32.mrb[1].mxu0 }
 0x1fa   :  { %v407_v28 = vmax.f32 %v404_v27, 0.0 }
 0x1fc   :  { %3474 = vmatmul.mubr.msk.f32.vlgmr.msra.gmra.mrb[2].mxu1 %vm499_vm6, %v407_v28 }
 0x1fd   :  { %3519 = vmatprep.mubr.msk.f32.mxu1 %vm4711_vm2, %v4710_v31 }
 0x220   :  { %v152_v30 = vpop.permute.xlu0 %151 }
 0x221   :  { %154 = vst.msk [vmem:[#allocation2 + $0x8] sm:$0xff] %vm54_vm1, %v152_v30 }
 0x224   :  { %v184_v34 = vpop.permute.xlu0 %183  ;;  %v168_v35 = vpop.permute.xlu1 %167 }
 0x225   :  { %170 = vst.msk [vmem:[#allocation2 + $0x8] sm:$0xff] %vm108_vm3, %v168_v35  ;;  %v728_v35 = vld [vmem:[#allocation4 + $0x80] sm:$0xff] }
 0x226   :  { %186 = vst.msk [vmem:[#allocation2 + $0x8] sm:$0xff] %vm125_vm4, %v184_v34 }
 0x228   :  { %v651_v47 = vpop.permute.xlu1 %650 }
 0x22c   :  { %v811_v50 = vpop.permute.xlu1 %810 }
 0x22d   :  { %v4998_v36 = vld [vmem:[#allocation2 + $0x8] sm:$0xff] }
 0x22e   :  { %1125 = vrot.lane.b32.xlu1 %v4998_v36, %s4715_s27  ;;  %652 = vrot.lane.b32.xlu0 %v4998_v36, %s4714_s0 }
 0x232   :  { %812 = vrot.lane.b32.xlu0 %v4998_v36, %s4712_s3  ;;  %204 = vperm.xlu1 %4640, %v4795_v3  }
 0x236   :  { %192 = vperm.xlu0 %4639, %v4795_v3   ;;  %4641 = vset.pattern.permute.xlu1 %v4720_v37  ;;  %v729_v37 = vld [vmem:[#allocation4 + $0x88] sm:$0xff] }
 0x237   :  { %220 = vperm.xlu1 %4641, %v4795_v3  }
 0x23a   :  { %4642 = vset.pattern.permute.xlu0 %v4721_v38  ;;  %v730_v38 = vld [vmem:[#allocation4 + $0x90] sm:$0xff] }
 0x23b   :  { %236 = vperm.xlu0 %4642, %v4795_v3  }
 0x26a   :  { %v486_v42 = vpop.f32.mrb[0].mxu1 }
 0x26b   :  { %v487_v43 = vadd.f32 %v4989_v23, %v486_v42  ;;  %v3437_v44 = vpop.f32.mrb[1].mxu1  ;;  %v4204_v42 = vpack.c.bf16 %v729_v37, %v728_v35 }
 0x26d   :  { %v490_v45 = vmax.f32 %v487_v43, 0.0  ;;  %v731_v43 = vld [vmem:[#allocation4 + $0x98] sm:$0xff]  ;;  %4205 = vmatpush3.bf16.msra.mxu1 %v4204_v42 }
 0x26e   :  { %v4207_v44 = vpack.c.bf16 %v731_v43, %v730_v38  ;;  %4206 = vmatprep.subr.bf16.mxu1 %v4709_v10 }
 0x26f   :  { %3455 = vmatmul.mubr.msk.f32.vlgmr.msra.gmra.mrb[2].mxu0 %vm499_vm6, %v490_v45  ;;  %v732_v45 = vld [vmem:[#allocation4 + $0xa0] sm:$0xff] }
 0x270   :  { %4187 = vmatpush3.bf16.msra.mxu0 %v4812_v11  ;;  %3500 = vmatprep.mubr.msk.f32.mxu0 %vm4711_vm2, %v4710_v31 }
 0x271   :  { %4188 = vmatprep.subr.bf16.mxu0 %v4709_v10  ;;  %4208 = vmatpush3.bf16.msra.mxu1 %v4207_v44  ;;  %v1045_v44 = vld [vmem:[#allocation4 + $0x110] sm:$0xff] }
 0x272   :  { %4209 = vmatprep.subr.bf16.mxu1 %v4709_v10 }
 0x274   :  { %4190 = vmatpush3.bf16.msra.mxu0 %v4819_v13 }
 0x275   :  { %4191 = vmatprep.subr.bf16.mxu0 %v4709_v10 }
 0x278   :  { %4193 = vmatpush3.bf16.msra.mxu0 %v4831_v16 }
 0x279   :  { %4194 = vmatprep.subr.bf16.mxu0 %v4709_v10 }
 0x27c   :  { %4196 = vmatpush3.bf16.msra.mxu0 %v4871_v32 }
 0x27d   :  { %4197 = vmatprep.subr.bf16.mxu0 %v4709_v10 }
 0x280   :  { %4199 = vmatpush3.bf16.msra.mxu0 %v4891_v41 }
 0x281   :  { %4200 = vmatprep.subr.bf16.mxu0 %v4709_v10 }
 0x284   :  { %4202 = vmatpush3.bf16.msra.mxu0 %v4914_v52 }
 0x285   :  { %4233 = vmatprep.subr.bf16.mxu0 %v4709_v10 }
 0x2a0   :  { %v653_v48 = vpop.permute.xlu0 %652  ;;  %v5033_v54 = vpop.permute.xlu1 %1125 }
 0x2a1   :  { %v654_v49 = vsel %vm499_vm6, %v651_v47, %v653_v48  ;;  %v733_v47 = vld [vmem:[#allocation4 + $0xa8] sm:$0xff] }
 0x2a2   :  { %3501 = vmatmul.mubr.msk.f32.vlgmr.msra.gmra.mrb[4].mxu0 %vm333_vm5, %v654_v49  ;;  %v4210_v48 = vpack.c.bf16 %v733_v47, %v732_v45  ;;  %v1046_v47 = vld [vmem:[#allocation4 + $0x118] sm:$0xff] }
 0x2a3   :  { %3565 = vmatprep.mubr.msk.f32.mxu0 %vm4711_vm2, %v4710_v31 }
 0x2a4   :  { %v813_v51 = vpop.permute.xlu0 %812  ;;  %4211 = vmatpush3.bf16.msra.mxu1 %v4210_v48  ;;  %v4267_v48 = vpack.c.bf16 %v1046_v47, %v1045_v44 }
 0x2a5   :  { %v5031_v53 = vsel %vm52_vm0, %v811_v50, %v813_v51  ;;  %4212 = vmatprep.subr.bf16.mxu1 %v4709_v10  ;;  %v734_v51 = vld [vmem:[#allocation4 + $0xb0] sm:$0xff] }
 0x2b1   :  { %v205_v55 = vpop.permute.xlu1 %204 }
 0x2b2   :  { %v215_v58 = vmul.f32 %v205_v55, %v4846_v21  ;;  %v207_v40 = vmul.f32 %v205_v55, %v4873_v33  ;;  %v233_v6 = vmul.f32 %v205_v55, %v4865_v29  ;;  %v4213_v55 = vpack.c.bf16 %v735_v39, %v734_v51 }
 0x2b4   :  { %v216_v59 = vadd.f32 %v4853_v24, %v215_v58  ;;  %4214 = vmatpush3.bf16.msra.mxu1 %v4213_v55 }
 0x2b5   :  { %v193_v60 = vpop.permute.xlu0 %192  ;;  %4215 = vmatprep.subr.bf16.mxu1 %v4709_v10 }
 0x2b6   :  { %v195_v62 = vmul.f32 %v193_v60, %v4873_v33  ;;  %v199_v63 = vmul.f32 %v193_v60, %v4846_v21  ;;  %v217_v0 = vmul.f32 %v193_v60, %v4865_v29  ;;  %v5045_v1 = vpop.permute.xlu1 %220 }
 0x2b7   :  { %v231_v7 = vmul.f32 %v5045_v1, %v4846_v21  ;;  %v223_v12 = vmul.f32 %v5045_v1, %v4873_v33 }
 0x2b8   :  { %v196_v8 = vadd.f32 %v195_v62, %v190_v61  ;;  %v200_v9 = vadd.f32 %v4853_v24, %v199_v63  ;;  %v218_v14 = vadd.f32 %v217_v0, %v216_v59 }
 0x2b9   :  { %v232_v15 = vadd.f32 %v4853_v24, %v231_v7  ;;  %v889_v7 = vld [vmem:[#allocation4 + $0xc8] sm:$0xff] }
 0x2ba   :  { %v197_v17 = vmax.f32 %v196_v8, 0.0  ;;  %v5057_v19 = vpop.permute.xlu0 %236  ;;  %v202_v46 = vadd.f32 %v201_v4, %v200_v9  ;;  %v224_v27 = vadd.f32 %v223_v12, %v218_v14  ;;  %v890_v8 = vld [vmem:[#allocation4 + $0xd0] sm:$0xff]  ;;  %v891_v12 = vld [vmem:[#allocation4 + $0xd8] sm:$0xff] }
 0x2bb   :  { %v239_v2 = vmul.f32 %v5057_v19, %v4873_v33  ;;  %v234_v20 = vadd.f32 %v233_v6, %v232_v15  ;;  %v888_v6 = vld [vmem:[#allocation4 + $0xc0] sm:$0xff]  ;;  %v4237_v14 = vpack.c.bf16 %v891_v12, %v890_v8 }
 0x2bc   :  { %198 = vst.msk [vmem:[#allocation2 + $0x10] sm:$0xff] %vm52_vm0, %v197_v17  ;;  %v208_v26 = vadd.f32 %v207_v40, %v202_v46  ;;  %v225_v34 = vmax.f32 %v224_v27, 0.0  ;;  %v4234_v9 = vpack.c.bf16 %v889_v7, %v888_v6  ;;  %v892_v15 = vld [vmem:[#allocation4 + $0xe0] sm:$0xff]  ;;  %v893_v17 = vld [vmem:[#allocation4 + $0xe8] sm:$0xff]  ;;  %v4723_v27 = vmov 12  }
 0x2bd   :  { %v240_v25 = vadd.f32 %v239_v2, %v234_v20  ;;  %v4240_v46 = vpack.c.bf16 %v893_v17, %v892_v15  ;;  %v895_v2 = vld [vmem:[#allocation4 + $0xf8] sm:$0xff]  ;;  %4643 = vset.pattern.permute.xlu0 %v4723_v27 }
 0x2be   :  { %v209_v28 = vmax.f32 %v208_v26, 0.0  ;;  %4235 = vmatpush3.bf16.msra.mxu0 %v4234_v9  ;;  %v4722_v26 = vmov 13   ;;  %v261_v9 = vmul.f32 %v5057_v19, %v4865_v29 }
 0x2bf   :  { %v241_v30 = vmax.f32 %v240_v25, 0.0  ;;  %4236 = vmatprep.subr.bf16.mxu0 %v4709_v10  ;;  %4644 = vset.pattern.permute.xlu1 %v4722_v26  ;;  %v4724_v25 = vmov 14  }
 0x2c0   :  { %211 = vrot.lane.b32.xlu1 %v209_v28, %s4712_s3  ;;  %v4725_v28 = vmov 15  }
 0x2c1   :  { %243 = vrot.lane.b32.xlu0 %v241_v30, %s4715_s27 }
 0x2c2   :  { %4238 = vmatpush3.bf16.msra.mxu0 %v4237_v14 }
 0x2c3   :  { %4239 = vmatprep.subr.bf16.mxu0 %v4709_v10 }
 0x2c4   :  { %227 = vrot.lane.b32.xlu1 %v225_v34, %s4714_s0 }
 0x2c6   :  { %4241 = vmatpush3.bf16.msra.mxu0 %v4240_v46 }
 0x2c7   :  { %4242 = vmatprep.subr.bf16.mxu0 %v4709_v10 }
 0x2c8   :  { %1286 = vrot.lane.b32.xlu1 %v4998_v36, %s4714_s0 }
 0x2cc   :  { %1446 = vrot.lane.b32.xlu1 %v4998_v36, %s4712_s3 }
 0x2cf   :  { %v642_v49 = vpop.f32.mrb[2].mxu1 }
 0x2d0   :  { %v3475_v50 = vpop.f32.mrb[3].mxu1 }
 0x2d1   :  { %v1048_v50 = vld [vmem:[#allocation4 + $0x128] sm:$0xff] }
 0x332   :  { %v212_v56 = vpop.permute.xlu1 %211 }
 0x333   :  { %214 = vst.msk [vmem:[#allocation2 + $0x10] sm:$0xff] %vm54_vm1, %v212_v56  ;;  %v244_v57 = vpop.permute.xlu0 %243  ;;  %v247_v56 = vmul.f32 %v5057_v19, %v4846_v21 }
 0x336   :  { %v228_v58 = vpop.permute.xlu1 %227 }
 0x337   :  { %230 = vst.msk [vmem:[#allocation2 + $0x10] sm:$0xff] %vm108_vm3, %v228_v58 }
 0x338   :  { %246 = vst.msk [vmem:[#allocation2 + $0x10] sm:$0xff] %vm125_vm4, %v244_v57 }
 0x33a   :  { %v5137_v39 = vpop.permute.xlu1 %1286 }
 0x33e   :  { %v5142_v55 = vpop.permute.xlu1 %1446 }
 0x33f   :  { %v5076_v59 = vld [vmem:[#allocation2 + $0x10] sm:$0xff] }
 0x340   :  { %1288 = vrot.lane.b32.xlu0 %v5076_v59, %s4714_s0  ;;  %1761 = vrot.lane.b32.xlu1 %v5076_v59, %s4715_s27 }
 0x342   :  { %v569_v60 = vpop.f32.mrb[2].mxu0 }
 0x343   :  { %v643_v61 = vadd.f32 %v642_v49, %v569_v60  ;;  %v3456_v62 = vpop.f32.mrb[3].mxu0  ;;  %v1047_v49 = vld [vmem:[#allocation4 + $0x120] sm:$0xff]  ;;  %v1049_v60 = vld [vmem:[#allocation4 + $0x130] sm:$0xff] }
 0x344   :  { %1448 = vrot.lane.b32.xlu0 %v5076_v59, %s4712_s3  ;;  %264 = vperm.xlu1 %4644, %v4795_v3   ;;  %v4270_v51 = vpack.c.bf16 %v1048_v50, %v1047_v49  ;;  %v249_v62 = vmul.f32 %v5045_v1, %v4865_v29 }
 0x348   :  { %252 = vperm.xlu0 %4643, %v4795_v3   ;;  %4645 = vset.pattern.permute.xlu1 %v4724_v25 }
 0x349   :  { %280 = vperm.xlu1 %4645, %v4795_v3  }
 0x34c   :  { %4646 = vset.pattern.permute.xlu0 %v4725_v28 }
 0x34d   :  { %296 = vperm.xlu0 %4646, %v4795_v3   ;;  %v1043_v3 = vld [vmem:[#allocation4 + $0x100] sm:$0xff] }
 0x351   :  { %4647 = vset.pattern.permute.xlu0 %v4707_v5  ;;  %v1044_v5 = vld [vmem:[#allocation4 + $0x108] sm:$0xff] }
 0x352   :  { %v4264_v45 = vpack.c.bf16 %v1044_v5, %v1043_v3 }
 0x375   :  { %v723_v63 = vpop.f32.mrb[4].mxu0 }
 0x376   :  { %v724_v0 = vadd.f32 %v4989_v23, %v723_v63  ;;  %v3502_v4 = vpop.f32.mrb[5].mxu0  ;;  %v248_v63 = vadd.f32 %v4853_v24, %v247_v56 }
 0x378   :  { %v727_v40 = vmax.f32 %v724_v0, 0.0  ;;  %v250_v7 = vadd.f32 %v249_v62, %v248_v63 }
 0x37a   :  { %3520 = vmatmul.mubr.msk.f32.vlgmr.msra.gmra.mrb[4].mxu1 %vm499_vm6, %v727_v40 }
 0x37b   :  { %4217 = vmatpush3.bf16.msra.mxu1 %v4812_v11  ;;  %3546 = vmatprep.mubr.msk.f32.mxu1 %vm4711_vm2, %v4710_v31 }
 0x37c   :  { %4218 = vmatprep.subr.bf16.mxu1 %v4709_v10 }
 0x37f   :  { %4220 = vmatpush3.bf16.msra.mxu1 %v4819_v13 }
 0x380   :  { %4221 = vmatprep.subr.bf16.mxu1 %v4709_v10 }
 0x383   :  { %4223 = vmatpush3.bf16.msra.mxu1 %v4831_v16 }
 0x384   :  { %4224 = vmatprep.subr.bf16.mxu1 %v4709_v10 }
 0x387   :  { %4226 = vmatpush3.bf16.msra.mxu1 %v4871_v32 }
 0x388   :  { %4227 = vmatprep.subr.bf16.mxu1 %v4709_v10 }
 0x38b   :  { %4229 = vmatpush3.bf16.msra.mxu1 %v4891_v41 }
 0x38c   :  { %4230 = vmatprep.subr.bf16.mxu1 %v4709_v10 }
 0x38f   :  { %4232 = vmatpush3.bf16.msra.mxu1 %v4914_v52 }
 0x390   :  { %4263 = vmatprep.subr.bf16.mxu1 %v4709_v10 }
 0x392   :  { %3547 = vmatmul.mubr.msk.f32.vlgmr.msra.gmra.mrb[6].mxu1 %vm333_vm5, %v5031_v53  ;;  %v894_v53 = vld [vmem:[#allocation4 + $0xf0] sm:$0xff] }
 0x393   :  { %3611 = vmatprep.mubr.msk.f32.mxu1 %vm4711_vm2, %v4710_v31  ;;  %v4243_v20 = vpack.c.bf16 %v895_v2, %v894_v53  ;;  %4265 = vmatpush3.bf16.msra.mxu1 %v4264_v45 }
 0x394   :  { %4266 = vmatprep.subr.bf16.mxu1 %v4709_v10 }
 0x395   :  { %4244 = vmatpush3.bf16.msra.mxu0 %v4243_v20 }
 0x396   :  { %4245 = vmatprep.subr.bf16.mxu0 %v4709_v10 }
 0x397   :  { %4268 = vmatpush3.bf16.msra.mxu1 %v4267_v48 }
 0x398   :  { %4269 = vmatprep.subr.bf16.mxu1 %v4709_v10 }
 0x39b   :  { %4271 = vmatpush3.bf16.msra.mxu1 %v4270_v51 }
 0x39c   :  { %4272 = vmatprep.subr.bf16.mxu1 %v4709_v10 }
 0x3b2   :  { %v5146_v57 = vpop.permute.xlu1 %1761 }
 0x3c3   :  { %v265_v6 = vpop.permute.xlu1 %264 }
 0x3c4   :  { %v275_v1 = vmul.f32 %v265_v6, %v4846_v21  ;;  %v267_v17 = vmul.f32 %v265_v6, %v4873_v33  ;;  %v293_v20 = vmul.f32 %v265_v6, %v4865_v29 }
 0x3c6   :  { %v276_v2 = vadd.f32 %v4853_v24, %v275_v1 }
 0x3c8   :  { %v281_v46 = vpop.permute.xlu1 %280 }
 0x3c9   :  { %v291_v26 = vmul.f32 %v281_v46, %v4846_v21  ;;  %v283_v19 = vmul.f32 %v281_v46, %v4873_v33  ;;  %v309_v28 = vmul.f32 %v281_v46, %v4865_v29 }
 0x3cb   :  { %v292_v25 = vadd.f32 %v4853_v24, %v291_v26 }
 0x44d   :  { %v805_v30 = vpop.f32.mrb[4].mxu1 }
 0x44e   :  { %v5113_v34 = vadd.f32 %v805_v30, %v643_v61  ;;  %v3521_v35 = vpop.f32.mrb[5].mxu1  ;;  %v1050_v61 = vld [vmem:[#allocation4 + $0x138] sm:$0xff] }
 0x44f   :  { %v4273_v0 = vpack.c.bf16 %v1050_v61, %v1049_v60 }
 0x451   :  { %4274 = vmatpush3.bf16.msra.mxu1 %v4273_v0  ;;  %v1200_v0 = vld [vmem:[#allocation4 + $0x140] sm:$0xff] }
 0x452   :  { %4275 = vmatprep.subr.bf16.mxu1 %v4709_v10 }
 0x465   :  { %v883_v37 = vpop.f32.mrb[6].mxu1 }
 0x466   :  { %v884_v38 = vadd.f32 %v4989_v23, %v883_v37  ;;  %v3548_v42 = vpop.f32.mrb[7].mxu1  ;;  %v294_v37 = vadd.f32 %v293_v20, %v292_v25  ;;  %v1364_v25 = vld [vmem:[#allocation4 + $0x180] sm:$0xff] }
 0x468   :  { %v887_v43 = vmax.f32 %v884_v38, 0.0 }
 0x46a   :  { %3566 = vmatmul.mubr.msk.f32.vlgmr.msra.gmra.mrb[6].mxu0 %vm499_vm6, %v887_v43 }
 0x46b   :  { %4247 = vmatpush3.bf16.msra.mxu0 %v4812_v11  ;;  %3592 = vmatprep.mubr.msk.f32.mxu0 %vm4711_vm2, %v4710_v31 }
 0x46c   :  { %4248 = vmatprep.subr.bf16.mxu0 %v4709_v10 }
 0x46f   :  { %4250 = vmatpush3.bf16.msra.mxu0 %v4819_v13 }
 0x470   :  { %4251 = vmatprep.subr.bf16.mxu0 %v4709_v10 }
 0x473   :  { %4253 = vmatpush3.bf16.msra.mxu0 %v4831_v16 }
 0x474   :  { %4254 = vmatprep.subr.bf16.mxu0 %v4709_v10 }
 0x477   :  { %4256 = vmatpush3.bf16.msra.mxu0 %v4871_v32 }
 0x478   :  { %4257 = vmatprep.subr.bf16.mxu0 %v4709_v10 }
 0x47b   :  { %4259 = vmatpush3.bf16.msra.mxu0 %v4891_v41 }
 0x47c   :  { %4260 = vmatprep.subr.bf16.mxu0 %v4709_v10 }
 0x47f   :  { %4262 = vmatpush3.bf16.msra.mxu0 %v4914_v52 }
 0x480   :  { %4293 = vmatprep.subr.bf16.mxu0 %v4709_v10 }
 0x482   :  { %3593 = vmatmul.mubr.msk.f32.vlgmr.msra.gmra.mrb[8].mxu0 %vm333_vm5, %v4998_v36  ;;  %v5140_v36 = vpop.permute.xlu0 %1288 }
 0x483   :  { %3657 = vmatprep.mubr.msk.f32.mxu0 %vm4711_vm2, %v4710_v31 }
 0x486   :  { %v5148_v58 = vpop.permute.xlu0 %1448 }
 0x48a   :  { %v253_v4 = vpop.permute.xlu0 %252 }
 0x48b   :  { %v259_v40 = vmul.f32 %v253_v4, %v4846_v21  ;;  %v255_v8 = vmul.f32 %v253_v4, %v4873_v33  ;;  %v277_v15 = vmul.f32 %v253_v4, %v4865_v29  ;;  %v1201_v4 = vld [vmem:[#allocation4 + $0x148] sm:$0xff] }
 0x48c   :  { %v4294_v6 = vpack.c.bf16 %v1201_v4, %v1200_v0 }
 0x48d   :  { %v260_v12 = vadd.f32 %v4853_v24, %v259_v40  ;;  %v256_v14 = vadd.f32 %v255_v8, %v250_v7  ;;  %v278_v43 = vadd.f32 %v277_v15, %v276_v2  ;;  %v1202_v40 = vld [vmem:[#allocation4 + $0x150] sm:$0xff]  ;;  %v1203_v7 = vld [vmem:[#allocation4 + $0x158] sm:$0xff] }
 0x48e   :  { %v297_v30 = vpop.permute.xlu0 %296  ;;  %4295 = vmatpush3.bf16.msra.mxu0 %v4294_v6  ;;  %v4297_v8 = vpack.c.bf16 %v1203_v7, %v1202_v40 }
 0x48f   :  { %v257_v53 = vmax.f32 %v256_v14, 0.0  ;;  %v262_v27 = vadd.f32 %v261_v9, %v260_v12  ;;  %v299_v38 = vmul.f32 %v297_v30, %v4873_v33  ;;  %v307_v42 = vmul.f32 %v297_v30, %v4846_v21  ;;  %4296 = vmatprep.subr.bf16.mxu0 %v4709_v10  ;;  %v1204_v9 = vld [vmem:[#allocation4 + $0x160] sm:$0xff]  ;;  %v1205_v12 = vld [vmem:[#allocation4 + $0x168] sm:$0xff]  ;;  %v1207_v14 = vld [vmem:[#allocation4 + $0x178] sm:$0xff] }
 0x490   :  { %v284_v45 = vadd.f32 %v283_v19, %v278_v43  ;;  %v4300_v1 = vpack.c.bf16 %v1205_v12, %v1204_v9  ;;  %v1290_v19 = vsel %vm499_vm6, %v5137_v39, %v5140_v36  ;;  %v1366_v30 = vld [vmem:[#allocation4 + $0x190] sm:$0xff]  ;;  %v1369_v43 = vld [vmem:[#allocation4 + $0x1a8] sm:$0xff]  ;;  %v1371_v36 = vld [vmem:[#allocation4 + $0x1b8] sm:$0xff] }
 0x491   :  { %258 = vst.msk [vmem:[#allocation2 + $0x18] sm:$0xff] %vm52_vm0, %v257_v53  ;;  %v268_v35 = vadd.f32 %v267_v17, %v262_v27  ;;  %v300_v5 = vadd.f32 %v299_v38, %v294_v37  ;;  %v308_v44 = vadd.f32 %v4853_v24, %v307_v42  ;;  %v1367_v37 = vld [vmem:[#allocation4 + $0x198] sm:$0xff]  ;;  %v1368_v42 = vld [vmem:[#allocation4 + $0x1a0] sm:$0xff]  ;;  %v1370_v39 = vld [vmem:[#allocation4 + $0x1b0] sm:$0xff] }
 0x492   :  { %v285_v48 = vmax.f32 %v284_v45, 0.0  ;;  %4298 = vmatpush3.bf16.msra.mxu0 %v4297_v8  ;;  %v4327_v38 = vpack.c.bf16 %v1367_v37, %v1366_v30 }
 0x493   :  { %v269_v3 = vmax.f32 %v268_v35, 0.0  ;;  %v310_v47 = vadd.f32 %v309_v28, %v308_v44  ;;  %v301_v49 = vmax.f32 %v300_v5, 0.0  ;;  %4299 = vmatprep.subr.bf16.mxu0 %v4709_v10  ;;  %v1365_v28 = vld [vmem:[#allocation4 + $0x188] sm:$0xff]  ;;  %v4333_v5 = vpack.c.bf16 %v1371_v36, %v1370_v39  ;;  %v1838_v36 = vld [vmem:[#allocation4 + $0x250] sm:$0xff] }
 0x494   :  { %v4324_v35 = vpack.c.bf16 %v1365_v28, %v1364_v25  ;;  %v1837_v39 = vld [vmem:[#allocation4 + $0x248] sm:$0xff] }
 0x495   :  { %271 = vrot.lane.b32.xlu1 %v269_v3, %s4712_s3  ;;  %v311_v50 = vmax.f32 %v310_v47, 0.0  ;;  %303 = vrot.lane.b32.xlu0 %v301_v49, %s4715_s27  ;;  %v4330_v3 = vpack.c.bf16 %v1369_v43, %v1368_v42 }
 0x496   :  { %4301 = vmatpush3.bf16.msra.mxu0 %v4300_v1 }
 0x497   :  { %312 = vst.msk [vmem:[#allocation2 + $0x20] sm:$0xff] %vm52_vm0, %v311_v50  ;;  %4302 = vmatprep.subr.bf16.mxu0 %v4709_v10 }
 0x499   :  { %287 = vrot.lane.b32.xlu1 %v285_v48, %s4714_s0 }
 0x49d   :  { %1922 = vrot.lane.b32.xlu1 %v5076_v59, %s4714_s0 }
 0x49e   :  { %v2555_v25 = vld [vmem:[#allocation2 + $0x20] sm:$0xff] }
 0x4a1   :  { %2082 = vrot.lane.b32.xlu1 %v5076_v59, %s4712_s3 }
 0x507   :  { %v272_v51 = vpop.permute.xlu1 %271  ;;  %v304_v63 = vpop.permute.xlu0 %303 }
 0x508   :  { %274 = vst.msk [vmem:[#allocation2 + $0x18] sm:$0xff] %vm54_vm1, %v272_v51  ;;  %v1526_v51 = vld [vmem:[#allocation4 + $0x1d0] sm:$0xff] }
 0x50b   :  { %v288_v62 = vpop.permute.xlu1 %287 }
 0x50c   :  { %290 = vst.msk [vmem:[#allocation2 + $0x18] sm:$0xff] %vm108_vm3, %v288_v62  ;;  %v1528_v62 = vld [vmem:[#allocation4 + $0x1e0] sm:$0xff] }
 0x50d   :  { %306 = vst.msk [vmem:[#allocation2 + $0x18] sm:$0xff] %vm125_vm4, %v304_v63  ;;  %v1529_v63 = vld [vmem:[#allocation4 + $0x1e8] sm:$0xff] }
 0x50e   :  { %v4360_v0 = vpack.c.bf16 %v1529_v63, %v1528_v62 }
 0x50f   :  { %v1923_v62 = vpop.permute.xlu1 %1922 }
 0x53d   :  { %v965_v21 = vpop.f32.mrb[6].mxu0 }
 0x53e   :  { %v969_v24 = vadd.f32 %v965_v21, %v5113_v34  ;;  %v3567_v29 = vpop.f32.mrb[7].mxu0  ;;  %v5192_v34 = vld [vmem:[#allocation2 + $0x18] sm:$0xff] }
 0x53f   :  { %1924 = vrot.lane.b32.xlu0 %v5192_v34, %s4714_s0  ;;  %2397 = vrot.lane.b32.xlu1 %v5192_v34, %s4715_s27  ;;  %v1524_v29 = vld [vmem:[#allocation4 + $0x1c0] sm:$0xff] }
 0x543   :  { %2084 = vrot.lane.b32.xlu0 %v5192_v34, %s4712_s3  ;;  %2560 = vrot.lane.b32.xlu1 %v2555_v25, %s4714_s0 }
 0x547   :  { %2558 = vrot.lane.b32.xlu0 %v5192_v34, %s4714_s0  ;;  %2720 = vrot.lane.b32.xlu1 %v2555_v25, %s4712_s3  ;;  %v2160_v25 = vld [vmem:[#allocation4 + $0x2c0] sm:$0xff] }
 0x54b   :  { %2718 = vrot.lane.b32.xlu0 %v5192_v34, %s4712_s3 }
 0x555   :  { %v1038_v33 = vpop.f32.mrb[8].mxu0 }
 0x556   :  { %v1039_v56 = vadd.f32 %v4989_v23, %v1038_v33  ;;  %v3594_v60 = vpop.f32.mrb[9].mxu0  ;;  %v1525_v33 = vld [vmem:[#allocation4 + $0x1c8] sm:$0xff] }
 0x557   :  { %v1527_v60 = vld [vmem:[#allocation4 + $0x1d8] sm:$0xff] }
 0x558   :  { %v1042_v61 = vmax.f32 %v1039_v56, 0.0  ;;  %v4354_v56 = vpack.c.bf16 %v1525_v33, %v1524_v29 }
 0x55a   :  { %3612 = vmatmul.mubr.msk.f32.vlgmr.msra.gmra.mrb[8].mxu1 %vm499_vm6, %v1042_v61  ;;  %v4357_v61 = vpack.c.bf16 %v1527_v60, %v1526_v51 }
 0x55b   :  { %4277 = vmatpush3.bf16.msra.mxu1 %v4812_v11  ;;  %3638 = vmatprep.mubr.msk.f32.mxu1 %vm4711_vm2, %v4710_v31 }
 0x55c   :  { %4278 = vmatprep.subr.bf16.mxu1 %v4709_v10 }
 0x55f   :  { %4280 = vmatpush3.bf16.msra.mxu1 %v4819_v13 }
 0x560   :  { %4281 = vmatprep.subr.bf16.mxu1 %v4709_v10 }
 0x563   :  { %4283 = vmatpush3.bf16.msra.mxu1 %v4831_v16 }
 0x564   :  { %4284 = vmatprep.subr.bf16.mxu1 %v4709_v10 }
 0x567   :  { %4286 = vmatpush3.bf16.msra.mxu1 %v4871_v32 }
 0x568   :  { %4287 = vmatprep.subr.bf16.mxu1 %v4709_v10 }
 0x56b   :  { %4289 = vmatpush3.bf16.msra.mxu1 %v4891_v41 }
 0x56c   :  { %4290 = vmatprep.subr.bf16.mxu1 %v4709_v10 }
 0x56f   :  { %4292 = vmatpush3.bf16.msra.mxu1 %v4914_v52 }
 0x570   :  { %4323 = vmatprep.subr.bf16.mxu1 %v4709_v10 }
 0x572   :  { %3639 = vmatmul.mubr.msk.f32.vlgmr.msra.gmra.mrb[10].mxu1 %vm333_vm5, %v5033_v54  ;;  %v1206_v54 = vld [vmem:[#allocation4 + $0x170] sm:$0xff] }
 0x573   :  { %3703 = vmatprep.mubr.msk.f32.mxu1 %vm4711_vm2, %v4710_v31  ;;  %v4303_v15 = vpack.c.bf16 %v1207_v14, %v1206_v54  ;;  %4325 = vmatpush3.bf16.msra.mxu1 %v4324_v35  ;;  %v1679_v54 = vld [vmem:[#allocation4 + $0x200] sm:$0xff]  ;;  %v1680_v14 = vld [vmem:[#allocation4 + $0x208] sm:$0xff] }
 0x574   :  { %4326 = vmatprep.subr.bf16.mxu1 %v4709_v10 }
 0x575   :  { %4304 = vmatpush3.bf16.msra.mxu0 %v4303_v15  ;;  %v1681_v15 = vld [vmem:[#allocation4 + $0x210] sm:$0xff] }
 0x576   :  { %4305 = vmatprep.subr.bf16.mxu0 %v4709_v10 }
 0x577   :  { %4328 = vmatpush3.bf16.msra.mxu1 %v4327_v38 }
 0x578   :  { %4329 = vmatprep.subr.bf16.mxu1 %v4709_v10 }
 0x57b   :  { %4331 = vmatpush3.bf16.msra.mxu1 %v4330_v3  ;;  %v1836_v3 = vld [vmem:[#allocation4 + $0x240] sm:$0xff] }
 0x57c   :  { %4332 = vmatprep.subr.bf16.mxu1 %v4709_v10 }
 0x57f   :  { %4334 = vmatpush3.bf16.msra.mxu1 %v4333_v5  ;;  %v4414_v5 = vpack.c.bf16 %v1837_v39, %v1836_v3  ;;  %v2166_v39 = vld [vmem:[#allocation4 + $0x2f0] sm:$0xff] }
 0x580   :  { %4335 = vmatprep.subr.bf16.mxu1 %v4709_v10 }
 0x62d   :  { %v1120_v17 = vpop.f32.mrb[8].mxu1 }
 0x62e   :  { %v1124_v46 = vadd.f32 %v1120_v17, %v969_v24  ;;  %v3613_v53 = vpop.f32.mrb[9].mxu1  ;;  %v1450_v24 = vsel %vm52_vm0, %v5142_v55, %v5148_v58  ;;  %v1530_v55 = vld [vmem:[#allocation4 + $0x1f0] sm:$0xff]  ;;  %v1531_v58 = vld [vmem:[#allocation4 + $0x1f8] sm:$0xff]  ;;  %v4384_v17 = vpack.c.bf16 %v1680_v14, %v1679_v54 }
 0x62f   :  { %v4363_v4 = vpack.c.bf16 %v1531_v58, %v1530_v55  ;;  %v2001_v55 = vld [vmem:[#allocation4 + $0x288] sm:$0xff]  ;;  %v2002_v58 = vld [vmem:[#allocation4 + $0x290] sm:$0xff] }
 0x645   :  { %v1195_v2 = vpop.f32.mrb[10].mxu1 }
 0x646   :  { %v1196_v20 = vadd.f32 %v4989_v23, %v1195_v2  ;;  %v3640_v26 = vpop.f32.mrb[11].mxu1  ;;  %v1683_v2 = vld [vmem:[#allocation4 + $0x220] sm:$0xff] }
 0x648   :  { %v1199_v27 = vmax.f32 %v1196_v20, 0.0  ;;  %v1684_v20 = vld [vmem:[#allocation4 + $0x228] sm:$0xff] }
 0x649   :  { %v4390_v26 = vpack.c.bf16 %v1684_v20, %v1683_v2 }
 0x64a   :  { %3658 = vmatmul.mubr.msk.f32.vlgmr.msra.gmra.mrb[10].mxu0 %vm499_vm6, %v1199_v27  ;;  %v1686_v27 = vld [vmem:[#allocation4 + $0x238] sm:$0xff] }
 0x64b   :  { %4307 = vmatpush3.bf16.msra.mxu0 %v4812_v11  ;;  %3684 = vmatprep.mubr.msk.f32.mxu0 %vm4711_vm2, %v4710_v31 }
 0x64c   :  { %4308 = vmatprep.subr.bf16.mxu0 %v4709_v10 }
 0x64f   :  { %4310 = vmatpush3.bf16.msra.mxu0 %v4819_v13 }
 0x650   :  { %4311 = vmatprep.subr.bf16.mxu0 %v4709_v10 }
 0x653   :  { %4313 = vmatpush3.bf16.msra.mxu0 %v4831_v16 }
 0x654   :  { %4314 = vmatprep.subr.bf16.mxu0 %v4709_v10 }
 0x657   :  { %4316 = vmatpush3.bf16.msra.mxu0 %v4871_v32 }
 0x658   :  { %4317 = vmatprep.subr.bf16.mxu0 %v4709_v10 }
 0x65b   :  { %4319 = vmatpush3.bf16.msra.mxu0 %v4891_v41 }
 0x65c   :  { %4320 = vmatprep.subr.bf16.mxu0 %v4709_v10 }
 0x65f   :  { %4322 = vmatpush3.bf16.msra.mxu0 %v4914_v52 }
 0x660   :  { %4353 = vmatprep.subr.bf16.mxu0 %v4709_v10 }
 0x662   :  { %3685 = vmatmul.mubr.msk.f32.vlgmr.msra.gmra.mrb[12].mxu0 %vm333_vm5, %v1290_v19 }
 0x663   :  { %3749 = vmatprep.mubr.msk.f32.mxu0 %vm4711_vm2, %v4710_v31  ;;  %4355 = vmatpush3.bf16.msra.mxu0 %v4354_v56 }
 0x664   :  { %4356 = vmatprep.subr.bf16.mxu0 %v4709_v10 }
 0x667   :  { %4358 = vmatpush3.bf16.msra.mxu0 %v4357_v61 }
 0x668   :  { %4359 = vmatprep.subr.bf16.mxu0 %v4709_v10 }
 0x66b   :  { %4361 = vmatpush3.bf16.msra.mxu0 %v4360_v0  ;;  %v2000_v0 = vld [vmem:[#allocation4 + $0x280] sm:$0xff] }
 0x66c   :  { %4362 = vmatprep.subr.bf16.mxu0 %v4709_v10 }
 0x66f   :  { %4364 = vmatpush3.bf16.msra.mxu0 %v4363_v4  ;;  %v4444_v4 = vpack.c.bf16 %v2001_v55, %v2000_v0 }
 0x670   :  { %4365 = vmatprep.subr.bf16.mxu0 %v4709_v10 }
 0x71d   :  { %v1277_v44 = vpop.f32.mrb[10].mxu0 }
 0x71e   :  { %v1281_v45 = vadd.f32 %v1277_v44, %v1124_v46  ;;  %v3659_v47 = vpop.f32.mrb[11].mxu0  ;;  %v1682_v46 = vld [vmem:[#allocation4 + $0x218] sm:$0xff] }
 0x71f   :  { %v4387_v53 = vpack.c.bf16 %v1682_v46, %v1681_v15  ;;  %v1839_v44 = vld [vmem:[#allocation4 + $0x258] sm:$0xff]  ;;  %v1840_v47 = vld [vmem:[#allocation4 + $0x260] sm:$0xff] }
 0x735   :  { %v1359_v48 = vpop.f32.mrb[12].mxu0 }
 0x736   :  { %v1360_v49 = vadd.f32 %v4989_v23, %v1359_v48  ;;  %v3686_v50 = vpop.f32.mrb[13].mxu0  ;;  %v1841_v48 = vld [vmem:[#allocation4 + $0x268] sm:$0xff] }
 0x737   :  { %v1843_v50 = vld [vmem:[#allocation4 + $0x278] sm:$0xff] }
 0x738   :  { %v1363_v21 = vmax.f32 %v1360_v49, 0.0  ;;  %v4420_v49 = vpack.c.bf16 %v1841_v48, %v1840_v47 }
 0x73a   :  { %3704 = vmatmul.mubr.msk.f32.vlgmr.msra.gmra.mrb[12].mxu1 %vm499_vm6, %v1363_v21 }
 0x73b   :  { %4337 = vmatpush3.bf16.msra.mxu1 %v4812_v11  ;;  %3730 = vmatprep.mubr.msk.f32.mxu1 %vm4711_vm2, %v4710_v31 }
 0x73c   :  { %4338 = vmatprep.subr.bf16.mxu1 %v4709_v10 }
 0x73f   :  { %4340 = vmatpush3.bf16.msra.mxu1 %v4819_v13 }
 0x740   :  { %4341 = vmatprep.subr.bf16.mxu1 %v4709_v10 }
 0x743   :  { %4343 = vmatpush3.bf16.msra.mxu1 %v4831_v16 }
 0x744   :  { %4344 = vmatprep.subr.bf16.mxu1 %v4709_v10 }
 0x747   :  { %4346 = vmatpush3.bf16.msra.mxu1 %v4871_v32 }
 0x748   :  { %4347 = vmatprep.subr.bf16.mxu1 %v4709_v10 }
 0x74b   :  { %4349 = vmatpush3.bf16.msra.mxu1 %v4891_v41 }
 0x74c   :  { %4350 = vmatprep.subr.bf16.mxu1 %v4709_v10 }
 0x74f   :  { %4352 = vmatpush3.bf16.msra.mxu1 %v4914_v52 }
 0x750   :  { %4383 = vmatprep.subr.bf16.mxu1 %v4709_v10 }
 0x752   :  { %3731 = vmatmul.mubr.msk.f32.vlgmr.msra.gmra.mrb[14].mxu1 %vm333_vm5, %v1450_v24 }
 0x753   :  { %3795 = vmatprep.mubr.msk.f32.mxu1 %vm4711_vm2, %v4710_v31  ;;  %4385 = vmatpush3.bf16.msra.mxu1 %v4384_v17 }
 0x754   :  { %4386 = vmatprep.subr.bf16.mxu1 %v4709_v10 }
 0x757   :  { %4388 = vmatpush3.bf16.msra.mxu1 %v4387_v53  ;;  %v5349_v53 = vld [vmem:[%s5495_s4] ss:$0 sm:$0xff] }
 0x758   :  { %4389 = vmatprep.subr.bf16.mxu1 %v4709_v10 }
 0x75b   :  { %4391 = vmatpush3.bf16.msra.mxu1 %v4390_v26 }
 0x75c   :  { %4392 = vmatprep.subr.bf16.mxu1 %v4709_v10 }
 0x80d   :  { %v1441_v40 = vpop.f32.mrb[12].mxu1 }
 0x80e   :  { %v1445_v6 = vadd.f32 %v1441_v40, %v1281_v45  ;;  %v3705_v7 = vpop.f32.mrb[13].mxu1  ;;  %v4417_v45 = vpack.c.bf16 %v1839_v44, %v1838_v36  ;;  %v2003_v40 = vld [vmem:[#allocation4 + $0x298] sm:$0xff] }
 0x80f   :  { %v2004_v7 = vld [vmem:[#allocation4 + $0x2a0] sm:$0xff]  ;;  %v2167_v36 = vld [vmem:[#allocation4 + $0x2f8] sm:$0xff] }
 0x825   :  { %v1519_v8 = vpop.f32.mrb[14].mxu1 }
 0x826   :  { %v1520_v9 = vadd.f32 %v4989_v23, %v1519_v8  ;;  %v3732_v12 = vpop.f32.mrb[15].mxu1  ;;  %v2005_v8 = vld [vmem:[#allocation4 + $0x2a8] sm:$0xff] }
 0x827   :  { %v2006_v12 = vld [vmem:[#allocation4 + $0x2b0] sm:$0xff] }
 0x828   :  { %v1523_v1 = vmax.f32 %v1520_v9, 0.0  ;;  %v4450_v9 = vpack.c.bf16 %v2005_v8, %v2004_v7 }
 0x82a   :  { %3750 = vmatmul.mubr.msk.f32.vlgmr.msra.gmra.mrb[14].mxu0 %vm499_vm6, %v1523_v1  ;;  %v2007_v1 = vld [vmem:[#allocation4 + $0x2b8] sm:$0xff] }
 0x82b   :  { %4367 = vmatpush3.bf16.msra.mxu0 %v4812_v11  ;;  %3776 = vmatprep.mubr.msk.f32.mxu0 %vm4711_vm2, %v4710_v31  ;;  %v4453_v54 = vpack.c.bf16 %v2007_v1, %v2006_v12  ;;  %v2473_v12 = vld [vmem:[#allocation4 + $0x348] sm:$0xff]  ;;  %v2474_v1 = vld [vmem:[#allocation4 + $0x350] sm:$0xff] }
 0x82c   :  { %4368 = vmatprep.subr.bf16.mxu0 %v4709_v10 }
 0x82f   :  { %4370 = vmatpush3.bf16.msra.mxu0 %v4819_v13 }
 0x830   :  { %4371 = vmatprep.subr.bf16.mxu0 %v4709_v10 }
 0x833   :  { %4373 = vmatpush3.bf16.msra.mxu0 %v4831_v16 }
 0x834   :  { %4374 = vmatprep.subr.bf16.mxu0 %v4709_v10 }
 0x837   :  { %4376 = vmatpush3.bf16.msra.mxu0 %v4871_v32 }
 0x838   :  { %4377 = vmatprep.subr.bf16.mxu0 %v4709_v10 }
 0x83b   :  { %4379 = vmatpush3.bf16.msra.mxu0 %v4891_v41 }
 0x83c   :  { %4380 = vmatprep.subr.bf16.mxu0 %v4709_v10 }
 0x83f   :  { %4382 = vmatpush3.bf16.msra.mxu0 %v4914_v52 }
 0x840   :  { %4413 = vmatprep.subr.bf16.mxu0 %v4709_v10 }
 0x842   :  { %3777 = vmatmul.mubr.msk.f32.vlgmr.msra.gmra.mrb[16].mxu0 %vm333_vm5, %v5076_v59  ;;  %v1685_v59 = vld [vmem:[#allocation4 + $0x230] sm:$0xff] }
 0x843   :  { %3841 = vmatprep.mubr.msk.f32.mxu0 %vm4711_vm2, %v4710_v31  ;;  %v4393_v19 = vpack.c.bf16 %v1686_v27, %v1685_v59  ;;  %4415 = vmatpush3.bf16.msra.mxu0 %v4414_v5  ;;  %v2083_v27 = vpop.permute.xlu1 %2082  ;;  %v4483_v5 = vpack.c.bf16 %v2167_v36, %v2166_v39  ;;  %v2637_v39 = vld [vmem:[#allocation4 + $0x388] sm:$0xff]  ;;  %v2638_v36 = vld [vmem:[#allocation4 + $0x390] sm:$0xff] }
 0x844   :  { %4416 = vmatprep.subr.bf16.mxu0 %v4709_v10 }
 0x845   :  { %4394 = vmatpush3.bf16.msra.mxu1 %v4393_v19 }
 0x846   :  { %4395 = vmatprep.subr.bf16.mxu1 %v4709_v10 }
 0x847   :  { %4418 = vmatpush3.bf16.msra.mxu0 %v4417_v45  ;;  %v2398_v8 = vpop.permute.xlu1 %2397 }
 0x848   :  { %4419 = vmatprep.subr.bf16.mxu0 %v4709_v10 }
 0x84b   :  { %4421 = vmatpush3.bf16.msra.mxu0 %v4420_v49 }
 0x84c   :  { %4422 = vmatprep.subr.bf16.mxu0 %v4709_v10 }
 0x8fd   :  { %v1601_v28 = vpop.f32.mrb[14].mxu0 }
 0x8fe   :  { %v1605_v30 = vadd.f32 %v1601_v28, %v1445_v6  ;;  %v3751_v35 = vpop.f32.mrb[15].mxu0  ;;  %v4447_v6 = vpack.c.bf16 %v2003_v40, %v2002_v58  ;;  %v2161_v28 = vld [vmem:[#allocation4 + $0x2c8] sm:$0xff] }
 0x8ff   :  { %v4474_v35 = vpack.c.bf16 %v2161_v28, %v2160_v25 }
 0x915   :  { %v1674_v37 = vpop.f32.mrb[16].mxu0 }
 0x916   :  { %v1675_v38 = vadd.f32 %v4989_v23, %v1674_v37  ;;  %v3778_v42 = vpop.f32.mrb[17].mxu0  ;;  %v2163_v37 = vld [vmem:[#allocation4 + $0x2d8] sm:$0xff] }
 0x917   :  { %v2164_v42 = vld [vmem:[#allocation4 + $0x2e0] sm:$0xff] }
 0x918   :  { %v1678_v43 = vmax.f32 %v1675_v38, 0.0 }
 0x91a   :  { %3796 = vmatmul.mubr.msk.f32.vlgmr.msra.gmra.mrb[16].mxu1 %vm499_vm6, %v1678_v43  ;;  %v2165_v43 = vld [vmem:[#allocation4 + $0x2e8] sm:$0xff] }
 0x91b   :  { %4397 = vmatpush3.bf16.msra.mxu1 %v4812_v11  ;;  %3822 = vmatprep.mubr.msk.f32.mxu1 %vm4711_vm2, %v4710_v31  ;;  %v4480_v3 = vpack.c.bf16 %v2165_v43, %v2164_v42  ;;  %v2561_v42 = vpop.permute.xlu1 %2560 }
 0x91c   :  { %4398 = vmatprep.subr.bf16.mxu1 %v4709_v10 }
 0x91f   :  { %4400 = vmatpush3.bf16.msra.mxu1 %v4819_v13 }
 0x920   :  { %4401 = vmatprep.subr.bf16.mxu1 %v4709_v10 }
 0x923   :  { %4403 = vmatpush3.bf16.msra.mxu1 %v4831_v16 }
 0x924   :  { %4404 = vmatprep.subr.bf16.mxu1 %v4709_v10 }
 0x927   :  { %4406 = vmatpush3.bf16.msra.mxu1 %v4871_v32 }
 0x928   :  { %4407 = vmatprep.subr.bf16.mxu1 %v4709_v10 }
 0x92b   :  { %4409 = vmatpush3.bf16.msra.mxu1 %v4891_v41 }
 0x92c   :  { %4410 = vmatprep.subr.bf16.mxu1 %v4709_v10 }
 0x92f   :  { %4412 = vmatpush3.bf16.msra.mxu1 %v4914_v52 }
 0x930   :  { %4443 = vmatprep.subr.bf16.mxu1 %v4709_v10 }
 0x932   :  { %3823 = vmatmul.mubr.msk.f32.vlgmr.msra.gmra.mrb[18].mxu1 %vm333_vm5, %v5146_v57  ;;  %v1842_v57 = vld [vmem:[#allocation4 + $0x270] sm:$0xff] }
 0x933   :  { %3887 = vmatprep.mubr.msk.f32.mxu1 %vm4711_vm2, %v4710_v31  ;;  %v4423_v21 = vpack.c.bf16 %v1843_v50, %v1842_v57  ;;  %4445 = vmatpush3.bf16.msra.mxu1 %v4444_v4 }
 0x934   :  { %4446 = vmatprep.subr.bf16.mxu1 %v4709_v10 }
 0x935   :  { %4424 = vmatpush3.bf16.msra.mxu0 %v4423_v21  ;;  %v2315_v21 = vld [vmem:[#allocation4 + $0x300] sm:$0xff] }
 0x936   :  { %4425 = vmatprep.subr.bf16.mxu0 %v4709_v10 }
 0x937   :  { %4448 = vmatpush3.bf16.msra.mxu1 %v4447_v6 }
 0x938   :  { %4449 = vmatprep.subr.bf16.mxu1 %v4709_v10 }
 0x93b   :  { %4451 = vmatpush3.bf16.msra.mxu1 %v4450_v9  ;;  %v2472_v9 = vld [vmem:[#allocation4 + $0x340] sm:$0xff] }
 0x93c   :  { %4452 = vmatprep.subr.bf16.mxu1 %v4709_v10 }
 0x93f   :  { %4454 = vmatpush3.bf16.msra.mxu1 %v4453_v54  ;;  %v4534_v54 = vpack.c.bf16 %v2473_v12, %v2472_v9 }
 0x940   :  { %4455 = vmatprep.subr.bf16.mxu1 %v4709_v10 }
 0x9ed   :  { %v1756_v24 = vpop.f32.mrb[16].mxu1 }
 0x9ee   :  { %v1760_v29 = vadd.f32 %v1756_v24, %v1605_v30  ;;  %v3797_v33 = vpop.f32.mrb[17].mxu1  ;;  %v2162_v30 = vld [vmem:[#allocation4 + $0x2d0] sm:$0xff]  ;;  %v2316_v24 = vld [vmem:[#allocation4 + $0x308] sm:$0xff] }
 0x9ef   :  { %v4477_v38 = vpack.c.bf16 %v2163_v37, %v2162_v30  ;;  %v4504_v33 = vpack.c.bf16 %v2316_v24, %v2315_v21 }
 0xa05   :  { %v1831_v51 = vpop.f32.mrb[18].mxu1 }
 0xa06   :  { %v1832_v56 = vadd.f32 %v4989_v23, %v1831_v51  ;;  %v3824_v60 = vpop.f32.mrb[19].mxu1  ;;  %v1925_v23 = vpop.permute.xlu0 %1924  ;;  %v2318_v51 = vld [vmem:[#allocation4 + $0x318] sm:$0xff] }
 0xa07   :  { %v1926_v63 = vsel %vm499_vm6, %v1923_v62, %v1925_v23  ;;  %v2319_v60 = vld [vmem:[#allocation4 + $0x320] sm:$0xff]  ;;  %v2322_v62 = vld [vmem:[#allocation4 + $0x338] sm:$0xff] }
 0xa08   :  { %v1835_v61 = vmax.f32 %v1832_v56, 0.0 }
 0xa0a   :  { %3842 = vmatmul.mubr.msk.f32.vlgmr.msra.gmra.mrb[18].mxu0 %vm499_vm6, %v1835_v61  ;;  %v2085_v59 = vpop.permute.xlu0 %2084  ;;  %v2320_v61 = vld [vmem:[#allocation4 + $0x328] sm:$0xff] }
 0xa0b   :  { %4427 = vmatpush3.bf16.msra.mxu0 %v4812_v11  ;;  %3868 = vmatprep.mubr.msk.f32.mxu0 %vm4711_vm2, %v4710_v31  ;;  %v2086_v19 = vsel %vm52_vm0, %v2083_v27, %v2085_v59  ;;  %v4510_v23 = vpack.c.bf16 %v2320_v61, %v2319_v60 }
 0xa0c   :  { %4428 = vmatprep.subr.bf16.mxu0 %v4709_v10 }
 0xa0f   :  { %4430 = vmatpush3.bf16.msra.mxu0 %v4819_v13 }
 0xa10   :  { %4431 = vmatprep.subr.bf16.mxu0 %v4709_v10 }
 0xa13   :  { %4433 = vmatpush3.bf16.msra.mxu0 %v4831_v16 }
 0xa14   :  { %4434 = vmatprep.subr.bf16.mxu0 %v4709_v10 }
 0xa17   :  { %4436 = vmatpush3.bf16.msra.mxu0 %v4871_v32 }
 0xa18   :  { %4437 = vmatprep.subr.bf16.mxu0 %v4709_v10 }
 0xa1b   :  { %4439 = vmatpush3.bf16.msra.mxu0 %v4891_v41 }
 0xa1c   :  { %4440 = vmatprep.subr.bf16.mxu0 %v4709_v10 }
 0xa1f   :  { %4442 = vmatpush3.bf16.msra.mxu0 %v4914_v52 }
 0xa20   :  { %4473 = vmatprep.subr.bf16.mxu0 %v4709_v10 }
 0xa22   :  { %3869 = vmatmul.mubr.msk.f32.vlgmr.msra.gmra.mrb[20].mxu0 %vm333_vm5, %v1926_v63 }
 0xa23   :  { %3933 = vmatprep.mubr.msk.f32.mxu0 %vm4711_vm2, %v4710_v31  ;;  %4475 = vmatpush3.bf16.msra.mxu0 %v4474_v35 }
 0xa24   :  { %4476 = vmatprep.subr.bf16.mxu0 %v4709_v10 }
 0xa27   :  { %4478 = vmatpush3.bf16.msra.mxu0 %v4477_v38  ;;  %v2559_v38 = vpop.permute.xlu0 %2558 }
 0xa28   :  { %4479 = vmatprep.subr.bf16.mxu0 %v4709_v10  ;;  %v2562_v43 = vsel %vm499_vm6, %v2559_v38, %v2561_v42 }
 0xa2b   :  { %4481 = vmatpush3.bf16.msra.mxu0 %v4480_v3  ;;  %v2636_v3 = vld [vmem:[#allocation4 + $0x380] sm:$0xff] }
 0xa2c   :  { %4482 = vmatprep.subr.bf16.mxu0 %v4709_v10 }
 0xa2f   :  { %4484 = vmatpush3.bf16.msra.mxu0 %v4483_v5  ;;  %v4564_v5 = vpack.c.bf16 %v2637_v39, %v2636_v3 }
 0xa30   :  { %4485 = vmatprep.subr.bf16.mxu0 %v4709_v10 }
 0xadd   :  { %v1913_v14 = vpop.f32.mrb[18].mxu0 }
 0xade   :  { %v1917_v15 = vadd.f32 %v1913_v14, %v1760_v29  ;;  %v3843_v17 = vpop.f32.mrb[19].mxu0  ;;  %v2317_v29 = vld [vmem:[#allocation4 + $0x310] sm:$0xff]  ;;  %v2475_v14 = vld [vmem:[#allocation4 + $0x358] sm:$0xff] }
 0xadf   :  { %v4507_v56 = vpack.c.bf16 %v2318_v51, %v2317_v29  ;;  %v2476_v17 = vld [vmem:[#allocation4 + $0x360] sm:$0xff] }
 0xaf5   :  { %v1995_v46 = vpop.f32.mrb[20].mxu0 }
 0xaf6   :  { %v1996_v2 = vadd.f32 %v5349_v53, %v1995_v46  ;;  %v3870_v20 = vpop.f32.mrb[21].mxu0  ;;  %v2477_v46 = vld [vmem:[#allocation4 + $0x368] sm:$0xff] }
 0xaf7   :  { %v2478_v20 = vld [vmem:[#allocation4 + $0x370] sm:$0xff] }
 0xaf8   :  { %v1999_v26 = vmax.f32 %v1996_v2, 0.0  ;;  %v4540_v2 = vpack.c.bf16 %v2477_v46, %v2476_v17 }
 0xafa   :  { %3888 = vmatmul.mubr.msk.f32.vlgmr.msra.gmra.mrb[20].mxu1 %vm499_vm6, %v1999_v26  ;;  %v2479_v26 = vld [vmem:[#allocation4 + $0x378] sm:$0xff] }
 0xafb   :  { %4457 = vmatpush3.bf16.msra.mxu1 %v4812_v11  ;;  %3914 = vmatprep.mubr.msk.f32.mxu1 %vm4711_vm2, %v4710_v31  ;;  %v4543_v59 = vpack.c.bf16 %v2479_v26, %v2478_v20 }
 0xafc   :  { %4458 = vmatprep.subr.bf16.mxu1 %v4709_v10 }
 0xaff   :  { %4460 = vmatpush3.bf16.msra.mxu1 %v4819_v13 }
 0xb00   :  { %4461 = vmatprep.subr.bf16.mxu1 %v4709_v10 }
 0xb03   :  { %4463 = vmatpush3.bf16.msra.mxu1 %v4831_v16 }
 0xb04   :  { %4464 = vmatprep.subr.bf16.mxu1 %v4709_v10 }
 0xb07   :  { %4466 = vmatpush3.bf16.msra.mxu1 %v4871_v32 }
 0xb08   :  { %4467 = vmatprep.subr.bf16.mxu1 %v4709_v10 }
 0xb0b   :  { %4469 = vmatpush3.bf16.msra.mxu1 %v4891_v41 }
 0xb0c   :  { %4470 = vmatprep.subr.bf16.mxu1 %v4709_v10 }
 0xb0f   :  { %4472 = vmatpush3.bf16.msra.mxu1 %v4914_v52 }
 0xb10   :  { %4503 = vmatprep.subr.bf16.mxu1 %v4709_v10 }
 0xb12   :  { %3915 = vmatmul.mubr.msk.f32.vlgmr.msra.gmra.mrb[22].mxu1 %vm333_vm5, %v2086_v19 }
 0xb13   :  { %3979 = vmatprep.mubr.msk.f32.mxu1 %vm4711_vm2, %v4710_v31  ;;  %4505 = vmatpush3.bf16.msra.mxu1 %v4504_v33 }
 0xb14   :  { %4506 = vmatprep.subr.bf16.mxu1 %v4709_v10 }
 0xb17   :  { %4508 = vmatpush3.bf16.msra.mxu1 %v4507_v56 }
 0xb18   :  { %4509 = vmatprep.subr.bf16.mxu1 %v4709_v10 }
 0xb1b   :  { %4511 = vmatpush3.bf16.msra.mxu1 %v4510_v23  ;;  %v2721_v23 = vpop.permute.xlu1 %2720 }
 0xb1c   :  { %4512 = vmatprep.subr.bf16.mxu1 %v4709_v10 }
 0xbcd   :  { %v2077_v44 = vpop.f32.mrb[20].mxu1 }
 0xbce   :  { %v2081_v45 = vadd.f32 %v2077_v44, %v1917_v15  ;;  %v3889_v47 = vpop.f32.mrb[21].mxu1  ;;  %v4537_v15 = vpack.c.bf16 %v2475_v14, %v2474_v1  ;;  %v2639_v44 = vld [vmem:[#allocation4 + $0x398] sm:$0xff] }
 0xbcf   :  { %v2640_v47 = vld [vmem:[#allocation4 + $0x3a0] sm:$0xff] }
 0xbe5   :  { %v2155_v48 = vpop.f32.mrb[22].mxu1 }
 0xbe6   :  { %v2156_v49 = vadd.f32 %v5349_v53, %v2155_v48  ;;  %v3916_v57 = vpop.f32.mrb[23].mxu1  ;;  %v2641_v48 = vld [vmem:[#allocation4 + $0x3a8] sm:$0xff] }
 0xbe7   :  { %v2642_v57 = vld [vmem:[#allocation4 + $0x3b0] sm:$0xff] }
 0xbe8   :  { %v2159_v50 = vmax.f32 %v2156_v49, 0.0  ;;  %v4570_v49 = vpack.c.bf16 %v2641_v48, %v2640_v47 }
 0xbea   :  { %3934 = vmatmul.mubr.msk.f32.vlgmr.msra.gmra.mrb[22].mxu0 %vm499_vm6, %v2159_v50  ;;  %v2643_v50 = vld [vmem:[#allocation4 + $0x3b8] sm:$0xff] }
 0xbeb   :  { %4487 = vmatpush3.bf16.msra.mxu0 %v4812_v11  ;;  %3960 = vmatprep.mubr.msk.f32.mxu0 %vm4711_vm2, %v4710_v31  ;;  %v4573_v21 = vpack.c.bf16 %v2643_v50, %v2642_v57 }
 0xbec   :  { %4488 = vmatprep.subr.bf16.mxu0 %v4709_v10 }
 0xbef   :  { %4490 = vmatpush3.bf16.msra.mxu0 %v4819_v13 }
 0xbf0   :  { %4491 = vmatprep.subr.bf16.mxu0 %v4709_v10 }
 0xbf3   :  { %4493 = vmatpush3.bf16.msra.mxu0 %v4831_v16 }
 0xbf4   :  { %4494 = vmatprep.subr.bf16.mxu0 %v4709_v10 }
 0xbf7   :  { %4496 = vmatpush3.bf16.msra.mxu0 %v4871_v32 }
 0xbf8   :  { %4497 = vmatprep.subr.bf16.mxu0 %v4709_v10 }
 0xbfb   :  { %4499 = vmatpush3.bf16.msra.mxu0 %v4891_v41 }
 0xbfc   :  { %4500 = vmatprep.subr.bf16.mxu0 %v4709_v10 }
 0xbff   :  { %4502 = vmatpush3.bf16.msra.mxu0 %v4914_v52 }
 0xc00   :  { %4533 = vmatprep.subr.bf16.mxu0 %v4709_v10 }
 0xc02   :  { %3961 = vmatmul.mubr.msk.f32.vlgmr.msra.gmra.mrb[24].mxu0 %vm333_vm5, %v5192_v34  ;;  %v2321_v34 = vld [vmem:[#allocation4 + $0x330] sm:$0xff] }
 0xc03   :  { %4025 = vmatprep.mubr.msk.f32.mxu0 %vm4711_vm2, %v4710_v31  ;;  %v4513_v63 = vpack.c.bf16 %v2322_v62, %v2321_v34  ;;  %4535 = vmatpush3.bf16.msra.mxu0 %v4534_v54  ;;  %v2796_v34 = vld [vmem:[#allocation4 + $0x3c0] sm:$0xff]  ;;  %v2798_v62 = vld [vmem:[#allocation4 + $0x3d0] sm:$0xff] }
 0xc04   :  { %4536 = vmatprep.subr.bf16.mxu0 %v4709_v10 }
 0xc05   :  { %4514 = vmatpush3.bf16.msra.mxu1 %v4513_v63 }
 0xc06   :  { %4515 = vmatprep.subr.bf16.mxu1 %v4709_v10 }
 0xc07   :  { %4538 = vmatpush3.bf16.msra.mxu0 %v4537_v15  ;;  %v3029_v15 = vld [vmem:[%s5497_s6] ss:$0 sm:$0xff]  ;;  %s4726_s6 = smov [#allocation7]  }
 0xc08   :  { %4539 = vmatprep.subr.bf16.mxu0 %v4709_v10  ;;  %s2986_s14 = sshll.u32 %s4726_s6, 4  ;;  %s2987_s14 = int_to_ptr.vmem [resolvable:$true] %s2986_s14 }
 0xc09   :  { %s4679_s15 = scalar_lea.vmem %s2987_s14, 32  ;;  %p4680_p9 = scmp.lt.s32.totalorder %s2987_s14, %s2987_s14 }
 0xc0b   :  { %4541 = vmatpush3.bf16.msra.mxu0 %v4540_v2 }
 0xc0c   :  { %4542 = vmatprep.subr.bf16.mxu0 %v4709_v10 }
 0xc0f   :  { %4544 = vmatpush3.bf16.msra.mxu0 %v4543_v59 }
 0xc10   :  { %4545 = vmatprep.subr.bf16.mxu0 %v4709_v10 }
 0xcbd   :  { %v2237_v0 = vpop.f32.mrb[22].mxu0 }
 0xcbe   :  { %v2241_v55 = vadd.f32 %v2237_v0, %v2081_v45  ;;  %v3935_v58 = vpop.f32.mrb[23].mxu0  ;;  %v4567_v45 = vpack.c.bf16 %v2639_v44, %v2638_v36  ;;  %v2799_v0 = vld [vmem:[#allocation4 + $0x3d8] sm:$0xff] }
 0xcd5   :  { %v2310_v4 = vpop.f32.mrb[24].mxu0 }
 0xcd6   :  { %v2311_v40 = vadd.f32 %v5349_v53, %v2310_v4  ;;  %v3962_v6 = vpop.f32.mrb[25].mxu0  ;;  %v2803_v4 = vld [vmem:[#allocation4 + $0x3f8] sm:$0xff] }
 0xcd8   :  { %v2314_v7 = vmax.f32 %v2311_v40, 0.0 }
 0xcda   :  { %3980 = vmatmul.mubr.msk.f32.vlgmr.msra.gmra.mrb[24].mxu1 %vm499_vm6, %v2314_v7 }
 0xcdb   :  { %4517 = vmatpush3.bf16.msra.mxu1 %v4812_v11  ;;  %4006 = vmatprep.mubr.msk.f32.mxu1 %vm4711_vm2, %v4710_v31 }
 0xcdc   :  { %4518 = vmatprep.subr.bf16.mxu1 %v4709_v10 }
 0xcdf   :  { %4520 = vmatpush3.bf16.msra.mxu1 %v4819_v13 }
 0xce0   :  { %4521 = vmatprep.subr.bf16.mxu1 %v4709_v10 }
 0xce3   :  { %4523 = vmatpush3.bf16.msra.mxu1 %v4831_v16 }
 0xce4   :  { %4524 = vmatprep.subr.bf16.mxu1 %v4709_v10 }
 0xce7   :  { %4526 = vmatpush3.bf16.msra.mxu1 %v4871_v32 }
 0xce8   :  { %4527 = vmatprep.subr.bf16.mxu1 %v4709_v10 }
 0xceb   :  { %4529 = vmatpush3.bf16.msra.mxu1 %v4891_v41 }
 0xcec   :  { %4530 = vmatprep.subr.bf16.mxu1 %v4709_v10 }
 0xcef   :  { %4532 = vmatpush3.bf16.msra.mxu1 %v4914_v52 }
 0xcf0   :  { %4563 = vmatprep.subr.bf16.mxu1 %v4709_v10 }
 0xcf2   :  { %4007 = vmatmul.mubr.msk.f32.vlgmr.msra.gmra.mrb[26].mxu1 %vm333_vm5, %v2398_v8 }
 0xcf3   :  { %4071 = vmatprep.mubr.msk.f32.mxu1 %vm4711_vm2, %v4710_v31  ;;  %4565 = vmatpush3.bf16.msra.mxu1 %v4564_v5 }
 0xcf4   :  { %4566 = vmatprep.subr.bf16.mxu1 %v4709_v10 }
 0xcf7   :  { %4568 = vmatpush3.bf16.msra.mxu1 %v4567_v45 }
 0xcf8   :  { %4569 = vmatprep.subr.bf16.mxu1 %v4709_v10 }
 0xcfb   :  { %4571 = vmatpush3.bf16.msra.mxu1 %v4570_v49 }
 0xcfc   :  { %4572 = vmatprep.subr.bf16.mxu1 %v4709_v10 }
 0xcff   :  { %4574 = vmatpush3.bf16.msra.mxu1 %v4573_v21 }
 0xd00   :  { %4575 = vmatprep.subr.bf16.mxu1 %v4709_v10 }
 0xdad   :  { %v2392_v27 = vpop.f32.mrb[24].mxu1 }
 0xdae   :  { %v2396_v19 = vadd.f32 %v2392_v27, %v2241_v55  ;;  %v3981_v25 = vpop.f32.mrb[25].mxu1  ;;  %v2801_v55 = vld [vmem:[#allocation4 + $0x3e8] sm:$0xff] }
 0xdc5   :  { %v2467_v28 = vpop.f32.mrb[26].mxu1 }
 0xdc6   :  { %v2468_v30 = vadd.f32 %v5349_v53, %v2467_v28  ;;  %v4008_v35 = vpop.f32.mrb[27].mxu1 }
 0xdc8   :  { %v2471_v37 = vmax.f32 %v2468_v30, 0.0 }
 0xdca   :  { %4026 = vmatmul.mubr.msk.f32.vlgmr.msra.gmra.mrb[26].mxu0 %vm499_vm6, %v2471_v37 }
 0xdcb   :  { %4547 = vmatpush3.bf16.msra.mxu0 %v4812_v11  ;;  %4052 = vmatprep.mubr.msk.f32.mxu0 %vm4711_vm2, %v4710_v31 }
 0xdcc   :  { %4548 = vmatprep.subr.bf16.mxu0 %v4709_v10 }
 0xdcf   :  { %4550 = vmatpush3.bf16.msra.mxu0 %v4819_v13 }
 0xdd0   :  { %4551 = vmatprep.subr.bf16.mxu0 %v4709_v10 }
 0xdd3   :  { %4553 = vmatpush3.bf16.msra.mxu0 %v4831_v16 }
 0xdd4   :  { %4554 = vmatprep.subr.bf16.mxu0 %v4709_v10 }
 0xdd7   :  { %4556 = vmatpush3.bf16.msra.mxu0 %v4871_v32 }
 0xdd8   :  { %4557 = vmatprep.subr.bf16.mxu0 %v4709_v10 }
 0xddb   :  { %4559 = vmatpush3.bf16.msra.mxu0 %v4891_v41 }
 0xddc   :  { %4560 = vmatprep.subr.bf16.mxu0 %v4709_v10 }
 0xddf   :  { %4562 = vmatpush3.bf16.msra.mxu0 %v4914_v52 }
 0xde0   :  { %4593 = vmatprep.subr.bf16.mxu0 %v4709_v10 }
 0xde2   :  { %4053 = vmatmul.mubr.msk.f32.vlgmr.msra.gmra.mrb[28].mxu0 %vm333_vm5, %v2562_v43 }
 0xde3   :  { %4117 = vmatprep.mubr.msk.f32.mxu0 %vm4711_vm2, %v4710_v31 }
 0xe9d   :  { %v2549_v24 = vpop.f32.mrb[26].mxu0 }
 0xe9e   :  { %v2553_v29 = vadd.f32 %v2549_v24, %v2396_v19  ;;  %v4027_v33 = vpop.f32.mrb[27].mxu0 }
 0xeb5   :  { %v2631_v51 = vpop.f32.mrb[28].mxu0 }
 0xeb6   :  { %v2632_v56 = vadd.f32 %v5349_v53, %v2631_v51  ;;  %v4054_v60 = vpop.f32.mrb[29].mxu0 }
 0xeb8   :  { %v2635_v61 = vmax.f32 %v2632_v56, 0.0 }
 0xeba   :  { %4072 = vmatmul.mubr.msk.f32.vlgmr.msra.gmra.mrb[28].mxu1 %vm499_vm6, %v2635_v61 }
 0xebb   :  { %4577 = vmatpush3.bf16.msra.mxu1 %v4812_v11  ;;  %4098 = vmatprep.mubr.msk.f32.mxu1 %vm4711_vm2, %v4710_v31  ;;  %v2719_v11 = vpop.permute.xlu0 %2718 }
 0xebc   :  { %4578 = vmatprep.subr.bf16.mxu1 %v4709_v10 }
 0xebf   :  { %4580 = vmatpush3.bf16.msra.mxu1 %v4819_v13  ;;  %v2722_v13 = vsel %vm52_vm0, %v2719_v11, %v2721_v23 }
 0xec0   :  { %4581 = vmatprep.subr.bf16.mxu1 %v4709_v10 }
 0xec3   :  { %4583 = vmatpush3.bf16.msra.mxu1 %v4831_v16  ;;  %v2797_v16 = vld [vmem:[#allocation4 + $0x3c8] sm:$0xff] }
 0xec4   :  { %4584 = vmatprep.subr.bf16.mxu1 %v4709_v10  ;;  %v4594_v63 = vpack.c.bf16 %v2797_v16, %v2796_v34 }
 0xec6   :  { %4595 = vmatpush3.bf16.msra.mxu0 %v4594_v63 }
 0xec7   :  { %4586 = vmatpush3.bf16.msra.mxu1 %v4871_v32  ;;  %v4597_v32 = vpack.c.bf16 %v2799_v0, %v2798_v62  ;;  %4596 = vmatprep.subr.bf16.mxu0 %v4709_v10 }
 0xec8   :  { %4587 = vmatprep.subr.bf16.mxu1 %v4709_v10 }
 0xeca   :  { %4598 = vmatpush3.bf16.msra.mxu0 %v4597_v32 }
 0xecb   :  { %4589 = vmatpush3.bf16.msra.mxu1 %v4891_v41  ;;  %v2800_v41 = vld [vmem:[#allocation4 + $0x3e0] sm:$0xff]  ;;  %4599 = vmatprep.subr.bf16.mxu0 %v4709_v10 }
 0xecc   :  { %4590 = vmatprep.subr.bf16.mxu1 %v4709_v10  ;;  %v4600_v58 = vpack.c.bf16 %v2801_v55, %v2800_v41 }
 0xece   :  { %4601 = vmatpush3.bf16.msra.mxu0 %v4600_v58 }
 0xecf   :  { %4592 = vmatpush3.bf16.msra.mxu1 %v4914_v52  ;;  %4602 = vmatprep.subr.bf16.mxu0 %v4709_v10  ;;  %v2802_v52 = vld [vmem:[#allocation4 + $0x3f0] sm:$0xff]  ;;  %v2888_v10 = vld [vmem:[#allocation3] sm:$0x1] }
 0xed0   :  { %v4603_v40 = vpack.c.bf16 %v2803_v4, %v2802_v52  ;;  %2891 = vperm.xlu0 %4647, %v2888_v10  }
 0xed2   :  { %4099 = vmatmul.mubr.msk.f32.vlgmr.msra.gmra.mrb[30].mxu1 %vm333_vm5, %v2722_v13  ;;  %4604 = vmatpush3.bf16.msra.mxu0 %v4603_v40 }
 0xed3   :  { %4120 = vmatprep.subr.mxu0 %v4710_v31 }
 0xf4f   :  { %v2892_v26 = vpop.permute.xlu0 %2891 }
 0xf8d   :  { %v2713_v6 = vpop.f32.mrb[28].mxu1 }
 0xf8e   :  { %v2717_v7 = vadd.f32 %v2713_v6, %v2553_v29  ;;  %v4073_v8 = vpop.f32.mrb[29].mxu1 }
 0xfa5   :  { %v2791_v9 = vpop.f32.mrb[30].mxu1 }
 0xfa6   :  { %v2792_v12 = vadd.f32 %v5349_v53, %v2791_v9  ;;  %v4100_v1 = vpop.f32.mrb[31].mxu1  ;;  %v2887_v53 = vld [vmem:[%s5498_s7] sm:$0x1]  ;;  %s4675_s7 = scalar_lea.vmem %s2987_s14, 16 }
 0xfa7   :  { %p4676_p8 = scmp.ne.s32.totalorder %s2987_s14, %s4675_s7  ;;  %p4681_p10 = scmp.lt.s32.totalorder %s4679_s15, %s4675_s7 }
 0xfa8   :  { %v2795_v54 = vmax.f32 %v2792_v12, 0.0 }
 0xfa9   :  { %p4682_p11 = por %p4681_p10, %p4680_p9 }
 0xfaa   :  { %4118 = vmatmul.mubr.msk.f32.vlgmr.msra.gmra.mrb[30].mxu0 %vm499_vm6, %v2795_v54 }
 0xfab   :  { %4122 = vmatprep.mubr.msk.f32.mxu0 %vm4711_vm2, %v4710_v31  ;;  %v2897_v31 = vrot.slane %v2892_v26, %v93_v22  ;;  %p4683_p12 = pnand %p4682_p11, %p4676_p8 }
0x107d   :  { %v2873_v14 = vpop.f32.mrb[30].mxu0 }
0x107e   :  { %v2877_v17 = vadd.f32 %v2873_v14, %v2717_v7  ;;  %v4119_v46 = vpop.f32.mrb[31].mxu0 }
0x1080   :  { %v2885_v2 = vadd.f32 %v3029_v15, %v2877_v17 }
0x1082   :  { %v2886_v20 = vmax.f32 %v2885_v2, 0.0 }
0x1084   :  { %4121 = vmatpush3.xpose.msra.mxu0 %v2886_v20 }
0x1087   :  { %4123 = vmatmul.mubr.f32.vlgmr.msra.gmra.mrb[32].mxu0 %v2887_v53 }
0x115a   :  { %v2964_v59 = vpop.f32.mrb[32].mxu0 }
0x115b   :  { %v2965_v27 = vadd.f32 %v2964_v59, %v2897_v31  ;;  %v4124_v19 = vpop.f32.mrb[33].mxu0 }
0x115d   :  { %v2968_v25 = vand.u32 2147483647, %v2965_v27  ;;  %vm2972_vm8 = vcmp.ge.f32.partialorder %v2965_v27, 0.0 }
0x115f   :  { %v2969_v28 = vsub.f32 0.0, %v2968_v25 }
0x1161   :  { %v2970_v30 = vmul.f32 1.442695, %v2969_v28 }
0x1163   :  { %4648 = vpow2.f32 %v2970_v30 }
0x116d   :  { %v4649_v35 = vpop.eup %4648 }
0x116e   :  { %v2973_v37 = vadd.f32 1.0, %v4649_v35 }
0x1170   :  { %4650 = vrcp.f32 %v2973_v37 }
0x117a   :  { %v4651_v38 = vpop.eup %4650 }
0x117b   :  { %v2976_v42 = vmul.f32 %v4651_v38, %v4649_v35 }
0x117d   :  { %v2977_v43 = vsel %vm2972_vm8, %v4651_v38, %v2976_v42 }
0x117e   :  { %2979 = vst.msk [vmem:[#allocation7] sm:$0x1] %vm2978_vm7, %v2977_v43 }
0x117f   :  { %4686 = shalt.err (!%p4683_p12)
}
0x1180   :  { %s4687_s18 = scalar_lea.hbm %s5500_s9, 16 }
0x1181   :  { %p4688_p13 = scmp.ne.s32.totalorder %s5500_s9, %s4687_s18  ;;  %p4691_p0 = scmp.lt.u32.totalorder %s4687_s18, %s5500_s9 }
0x1183   :  { %p4693_p1 = pnand %p4691_p0, %p4688_p13 }
0x1185   :  { %4696 = shalt.err (!%p4693_p1)
}
0x1186   :  { %2989 = dma.vmem_to_hbm [thread:$0]  %s2987_s14, 16, %s5500_s9, [#allocation6]  }
0x1187   :  { %4699 = dma.done.wait [#allocation6], 16  }
0x1188   :  { %4700 = vsyncadd [#allocation6], 4294967280 }
0x1189   :  { %2993 = vsyncpa [#allocation5], 1 }
0x118a   :  { %2994 = vsyncpa [#allocation6], 1 }

</bundles_post_ra>
